<compile_context>
chip_gen: v6e
topology: v6e:2x2x1
jax: 0.10.0
libtpu: 0.0.40
codegen_flags: <defaults>
</compile_context>

<pallas_src>
import jax
import jax.numpy as jnp
from jax import lax
from jax.experimental import pallas as pl
from jax.experimental.pallas import tpu as pltpu

_EPS = 1e-5


# ----------------------------------------------------------------------------
# Static layer geometry (from the Encoder definition): layer 0 is 3x3/s1/p1,
# every downsampling layer is 4x4/s2/p1.  Plain Python ints only.
# ----------------------------------------------------------------------------
def _layer_geometry(layer_idx):
    if layer_idx == 0:
        return 3, 3, 1, 1            # kh, kw, stride, pad
    return 4, 4, 2, 1


def _pick_batch_tile(batch, p):
    """Largest divisor of `batch` such that the matmul M dim (bt * p) stays
    near the 256-row MXU sweet spot: folds small-spatial layers into one big
    matmul while keeping a multi-step parallel grid when the batch is large."""
    max_bt = max(1, 256 // p)
    bt = 1
    for d in range(1, batch + 1):
        if batch % d == 0 and d <= max_bt:
            bt = d
    return bt


# ----------------------------------------------------------------------------
# Pallas kernel: fused (patches @ W) -> InstanceNorm -> ReLU for bt samples.
# ----------------------------------------------------------------------------
def _conv_in_relu_kernel(p_ref, w_ref, o_ref):
    # p_ref: (bt, P, K) bf16 patches, w_ref: (K, C) bf16, o_ref: (bt, P, C) bf16
    bt, P, K = p_ref.shape
    C = w_ref.shape[1]
    # Single MXU matmul for all bt samples (bf16 operands, f32 accumulation).
    y = jnp.dot(p_ref[...].reshape(bt * P, K), w_ref[...],
                preferred_element_type=jnp.float32).reshape(bt, P, C)
    # InstanceNorm2d (no affine): per-(sample, channel) stats over the P
    # spatial positions; single pass (var = E[y^2] - mu^2), rsqrt on the EUP.
    mu = jnp.mean(y, axis=1, keepdims=True)
    var = jnp.mean(y * y, axis=1, keepdims=True) - mu * mu
    yn = (y - mu) * lax.rsqrt(var + _EPS)
    o_ref[...] = jnp.maximum(yn, 0.0).astype(o_ref.dtype)


def _fused_conv_block(patches, w_mat):
    """patches: [B, P, K] bf16, w_mat: [K, C] bf16 -> [B, P, C] bf16."""
    B, P, K = patches.shape
    C = w_mat.shape[1]
    bt = _pick_batch_tile(B, P)
    grid = (B // bt,)
    return pl.pallas_call(
        _conv_in_relu_kernel,
        out_shape=jax.ShapeDtypeStruct((B, P, C), jnp.bfloat16),
        grid_spec=pltpu.PrefetchScalarGridSpec(
            num_scalar_prefetch=0,
            grid=grid,
            in_specs=[
                pl.BlockSpec((bt, P, K), lambda g: (g, 0, 0)),
                pl.BlockSpec((K, C), lambda g: (0, 0)),
            ],
            out_specs=pl.BlockSpec((bt, P, C), lambda g: (g, 0, 0)),
        ),
        compiler_params=pltpu.CompilerParams(
            dimension_semantics=("parallel",),       # batch-tile axis -> 2 TCs on v7x
            vmem_limit_bytes=32 * 1024 * 1024,
        ),
    )(patches, w_mat)


# ----------------------------------------------------------------------------
# Plain-JAX glue: channels-last im2col without any HBM transpose.
# ----------------------------------------------------------------------------
def _im2col_nhwc(x, kh, kw, stride, pad):
    """x: [B, H, W, C] -> patches [B, Ho*Wo, kh*kw*C], K-order k=(i*kw+j)*C+c
    (matches _flatten_conv_weight).  Shifted windows are concatenated along
    the channel (lane) axis, so no transpose/relayout is needed."""
    B, H, W, C = x.shape
    Ho = (H + 2 * pad - kh) // stride + 1
    Wo = (W + 2 * pad - kw) // stride + 1
    xp = jnp.pad(x, ((0, 0), (pad, pad), (pad, pad), (0, 0)))
    cols = []
    for i in range(kh):
        for j in range(kw):
            cols.append(xp[:, i:i + stride * Ho:stride,
                           j:j + stride * Wo:stride, :])    # [B, Ho, Wo, C]
    patches = jnp.concatenate(cols, axis=-1)                 # [B, Ho, Wo, kh*kw*C]
    return patches.reshape(B, Ho * Wo, kh * kw * C), Ho, Wo


def _conv_layer(x, w_mat, layer_idx):
    """One Conv2d(+InstanceNorm+ReLU) block; x NHWC, w_mat [K, Cout] bf16."""
    kh, kw, stride, pad = _layer_geometry(layer_idx)
    B = x.shape[0]
    C = w_mat.shape[1]
    patches, Ho, Wo = _im2col_nhwc(x, kh, kw, stride, pad)
    patches = patches.astype(jnp.bfloat16)    # bf16 MXU operand, halved HBM traffic
    out = _fused_conv_block(patches, w_mat)   # [B, Ho*Wo, C] bf16
    return out.reshape(B, Ho, Wo, C)


@jax.jit
def encoder_forward(x_nchw, w_mats):
    """x_nchw: [B, Cin, H, W] f32; w_mats: tuple of pre-flattened bf16 [K, C]."""
    out = jnp.transpose(x_nchw, (0, 2, 3, 1))         # NCHW -> NHWC, once
    for idx, w_mat in enumerate(w_mats):
        out = _conv_layer(out, w_mat, idx)
    # Back to NCHW once at the encoder boundary (matches the PyTorch module).
    return jnp.transpose(out, (0, 3, 1, 2)).astype(jnp.float32)


# ----------------------------------------------------------------------------
# Parameters
# ----------------------------------------------------------------------------
def init_encoder_params(key, input_dim, ch, n_downs):
    """f32 PyTorch-layout parameters (used by the reference; the bias is kept
    there to demonstrate numerically that InstanceNorm cancels it)."""
    params = []
    cin, cout = input_dim, ch
    for layer_idx in range(n_downs + 1):
        kh, kw, _, _ = _layer_geometry(layer_idx)
        key, k_w, k_b = jax.random.split(key, 3)
        params.append(dict(
            w=0.05 * jax.random.normal(k_w, (cout, cin, kh, kw), jnp.float32),
            b=0.05 * jax.random.normal(k_b, (cout,), jnp.float32)))
        cin, cout = cout, cout * 2
    return params


def _flatten_conv_weight(w):
    """[Cout, Cin, kh, kw] -> [kh*kw*Cin, Cout] with row order
    k = (i*kw + j)*Cin + ci, matching the im2col channel-concat order."""
    cout, cin, kh, kw = w.shape
    return jnp.transpose(w, (2, 3, 1, 0)).reshape(kh * kw * cin, cout)


def prepare_kernel_weights(params):
    """Pre-flatten + cast conv weights once at init.  The conv bias is
    intentionally dropped: the no-affine InstanceNorm cancels it exactly."""
    return tuple(_flatten_conv_weight(p["w"]).astype(jnp.bfloat16)
                 for p in params)


# ----------------------------------------------------------------------------
# Pure-JAX f32 reference (lax.conv, with bias) for a correctness sanity check.
# ----------------------------------------------------------------------------
def _reference_forward(x, params):
    out = x
    for idx, p in enumerate(params):
        kh, kw, stride, pad = _layer_geometry(idx)
        y = lax.conv_general_dilated(
            out, p["w"], window_strides=(stride, stride),
            padding=((pad, pad), (pad, pad)),
            dimension_numbers=("NCHW", "OIHW", "NCHW"))
        y = y + p["b"][None, :, None, None]
        mu = jnp.mean(y, axis=(2, 3), keepdims=True)
        var = jnp.mean((y - mu) ** 2, axis=(2, 3), keepdims=True)
        out = jnp.maximum((y - mu) * lax.rsqrt(var + _EPS), 0.0)
    return out


if __name__ == "__main__":
    # Small shapes consistent with the module: batch=2, input_dim=4, 16x16
    # frames, init_dim=32, n_downs=2 (-> channel widths 32 / 64 / 128).
    B, CIN, H, W = 2, 4, 16, 16
    CH, N_DOWNS = 32, 2

    key = jax.random.PRNGKey(0)
    kx, kp = jax.random.split(key)
    x = jax.random.normal(kx, (B, CIN, H, W), jnp.float32)

    params = init_encoder_params(kp, CIN, CH, N_DOWNS)
    w_mats = prepare_kernel_weights(params)

    out = jax.block_until_ready(encoder_forward(x, w_mats))

    resize = 2 ** N_DOWNS
    assert out.shape == (B, CH * resize, H // resize, W // resize), out.shape

    ref = jax.block_until_ready(_reference_forward(x, params))
    max_err = float(jnp.max(jnp.abs(out - ref)))
    # bf16 MXU operands + bf16 inter-layer activations vs. an all-f32
    # reference: expect a few 1e-2 absolute on O(1) normalized activations.
    assert jnp.allclose(out, ref, atol=6e-2, rtol=6e-2), max_err

    print("KERNEL_OK")
</pallas_src>

<mosaic_0001>
module attributes {stable_mosaic.version = 11 : i64} {
  func.func @_conv_in_relu_kernel(%arg0: i32, %arg1: memref<1x256x36xbf16, #tpu.memory_space<vmem>>, %arg2: memref<36x32xbf16, #tpu.memory_space<vmem>>, %arg3: memref<1x256x32xbf16, #tpu.memory_space<vmem>>) attributes {dimension_semantics = [#tpu.dimension_semantics<parallel>], iteration_bounds = array<i64: 2>, scalar_prefetch = 0 : i64, scratch_operands = 0 : i64, tpu.core_type = #tpu.core_type<tc>, window_params = [{transform_indices = @transform_0, window_bounds = array<i64: 1, 256, 36>}, {pipeline_mode = #tpu.pipeline_mode<synchronous>, transform_indices = @transform_1, window_bounds = array<i64: 36, 32>}, {transform_indices = @transform_2, window_bounds = array<i64: 1, 256, 32>}]} {
    %c0 = arith.constant 0 : index
    %c0_0 = arith.constant 0 : index
    %c0_1 = arith.constant 0 : index
    %0 = vector.load %arg1[%c0, %c0_0, %c0_1] : memref<1x256x36xbf16, #tpu.memory_space<vmem>>, vector<1x256x36xbf16>
    %1 = vector.shape_cast %0 : vector<1x256x36xbf16> to vector<256x36xbf16>
    %c0_2 = arith.constant 0 : index
    %c0_3 = arith.constant 0 : index
    %2 = vector.load %arg2[%c0_2, %c0_3] : memref<36x32xbf16, #tpu.memory_space<vmem>>, vector<36x32xbf16>
    %cst = arith.constant dense<0.000000e+00> : vector<256x32xf32>
    %3 = tpu.matmul %1, %2, %cst {dimension_numbers = #tpu.dot_dimension_numbers<[1], [0], [0], [1], [0, 0, 1, 1], [], []>} : vector<256x36xbf16>, vector<36x32xbf16>, vector<256x32xf32> -> vector<256x32xf32>
    %4 = vector.shape_cast %3 : vector<256x32xf32> to vector<1x256x32xf32>
    %cst_4 = arith.constant dense<0.000000e+00> : vector<1x32xf32>
    %5 = vector.multi_reduction <add>, %4, %cst_4 [1] : vector<1x256x32xf32> to vector<1x32xf32>
    %6 = vector.shape_cast %5 : vector<1x32xf32> to vector<1x1x32xf32>
    %cst_5 = arith.constant 2.560000e+02 : f32
    %7 = vector.broadcast %cst_5 : f32 to vector<1x1x32xf32>
    %8 = arith.divf %6, %7 : vector<1x1x32xf32>
    %9 = arith.mulf %4, %4 : vector<1x256x32xf32>
    %cst_6 = arith.constant dense<0.000000e+00> : vector<1x32xf32>
    %10 = vector.multi_reduction <add>, %9, %cst_6 [1] : vector<1x256x32xf32> to vector<1x32xf32>
    %11 = vector.shape_cast %10 : vector<1x32xf32> to vector<1x1x32xf32>
    %cst_7 = arith.constant 2.560000e+02 : f32
    %12 = vector.broadcast %cst_7 : f32 to vector<1x1x32xf32>
    %13 = arith.divf %11, %12 : vector<1x1x32xf32>
    %14 = arith.mulf %8, %8 : vector<1x1x32xf32>
    %15 = arith.subf %13, %14 : vector<1x1x32xf32>
    %16 = vector.broadcast %8 : vector<1x1x32xf32> to vector<1x256x32xf32>
    %17 = arith.subf %4, %16 : vector<1x256x32xf32>
    %cst_8 = arith.constant 9.99999974E-6 : f32
    %18 = vector.broadcast %cst_8 : f32 to vector<1x1x32xf32>
    %19 = arith.addf %15, %18 : vector<1x1x32xf32>
    %20 = math.rsqrt %19 : vector<1x1x32xf32>
    %21 = vector.broadcast %20 : vector<1x1x32xf32> to vector<1x256x32xf32>
    %22 = arith.mulf %17, %21 : vector<1x256x32xf32>
    %cst_9 = arith.constant 0.000000e+00 : f32
    %23 = vector.broadcast %cst_9 : f32 to vector<1x256x32xf32>
    %24 = arith.maximumf %22, %23 : vector<1x256x32xf32>
    %25 = arith.truncf %24 : vector<1x256x32xf32> to vector<1x256x32xbf16>
    %c0_10 = arith.constant 0 : index
    %c0_11 = arith.constant 0 : index
    %c0_12 = arith.constant 0 : index
    %26 = vector.load %arg3[%c0_10, %c0_11, %c0_12] : memref<1x256x32xbf16, #tpu.memory_space<vmem>>, vector<1x256x32xbf16>
    tpu.vector_store %arg3[%c0_10, %c0_11, %c0_12], %25 {strides = array<i32>} : memref<1x256x32xbf16, #tpu.memory_space<vmem>>, vector<1x256x32xbf16>,
    return
  }
  func.func @transform_0(%arg0: i32) -> (i32, i32, i32) {
    %c0_i32 = arith.constant 0 : i32
    %c0_i32_0 = arith.constant 0 : i32
    %c0_i32_1 = arith.constant 0 : i32
    return %arg0, %c0_i32, %c0_i32_0 : i32, i32, i32
  }
  func.func @transform_1(%arg0: i32) -> (i32, i32) {
    %c0_i32 = arith.constant 0 : i32
    %c0_i32_0 = arith.constant 0 : i32
    %c0_i32_1 = arith.constant 0 : i32
    return %c0_i32, %c0_i32_0 : i32, i32
  }
  func.func @transform_2(%arg0: i32) -> (i32, i32, i32) {
    %c0_i32 = arith.constant 0 : i32
    %c0_i32_0 = arith.constant 0 : i32
    %c0_i32_1 = arith.constant 0 : i32
    return %arg0, %c0_i32, %c0_i32_0 : i32, i32, i32
  }
}

module attributes {stable_mosaic.version = 11 : i64} {
  func.func @_conv_in_relu_kernel(%arg0: i32, %arg1: memref<2x64x512xbf16, #tpu.memory_space<vmem>>, %arg2: memref<512x64xbf16, #tpu.memory_space<vmem>>, %arg3: memref<2x64x64xbf16, #tpu.memory_space<vmem>>) attributes {dimension_semantics = [#tpu.dimension_semantics<parallel>], iteration_bounds = array<i64: 1>, scalar_prefetch = 0 : i64, scratch_operands = 0 : i64, tpu.core_type = #tpu.core_type<tc>, window_params = [{transform_indices = @transform_0, window_bounds = array<i64: 2, 64, 512>}, {pipeline_mode = #tpu.pipeline_mode<synchronous>, transform_indices = @transform_1, window_bounds = array<i64: 512, 64>}, {transform_indices = @transform_2, window_bounds = array<i64: 2, 64, 64>}]} {
    %c0 = arith.constant 0 : index
    %c0_0 = arith.constant 0 : index
    %c0_1 = arith.constant 0 : index
    %0 = vector.load %arg1[%c0, %c0_0, %c0_1] : memref<2x64x512xbf16, #tpu.memory_space<vmem>>, vector<2x64x512xbf16>
    %1 = vector.shape_cast %0 : vector<2x64x512xbf16> to vector<128x512xbf16>
    %c0_2 = arith.constant 0 : index
    %c0_3 = arith.constant 0 : index
    %2 = vector.load %arg2[%c0_2, %c0_3] : memref<512x64xbf16, #tpu.memory_space<vmem>>, vector<512x64xbf16>
    %cst = arith.constant dense<0.000000e+00> : vector<128x64xf32>
    %3 = tpu.matmul %1, %2, %cst {dimension_numbers = #tpu.dot_dimension_numbers<[1], [0], [0], [1], [0, 0, 1, 1], [], []>} : vector<128x512xbf16>, vector<512x64xbf16>, vector<128x64xf32> -> vector<128x64xf32>
    %4 = vector.shape_cast %3 : vector<128x64xf32> to vector<2x64x64xf32>
    %cst_4 = arith.constant dense<0.000000e+00> : vector<2x64xf32>
    %5 = vector.multi_reduction <add>, %4, %cst_4 [1] : vector<2x64x64xf32> to vector<2x64xf32>
    %6 = vector.shape_cast %5 : vector<2x64xf32> to vector<2x1x64xf32>
    %cst_5 = arith.constant 6.400000e+01 : f32
    %7 = vector.broadcast %cst_5 : f32 to vector<2x1x64xf32>
    %8 = arith.divf %6, %7 : vector<2x1x64xf32>
    %9 = arith.mulf %4, %4 : vector<2x64x64xf32>
    %cst_6 = arith.constant dense<0.000000e+00> : vector<2x64xf32>
    %10 = vector.multi_reduction <add>, %9, %cst_6 [1] : vector<2x64x64xf32> to vector<2x64xf32>
    %11 = vector.shape_cast %10 : vector<2x64xf32> to vector<2x1x64xf32>
    %cst_7 = arith.constant 6.400000e+01 : f32
    %12 = vector.broadcast %cst_7 : f32 to vector<2x1x64xf32>
    %13 = arith.divf %11, %12 : vector<2x1x64xf32>
    %14 = arith.mulf %8, %8 : vector<2x1x64xf32>
    %15 = arith.subf %13, %14 : vector<2x1x64xf32>
    %16 = vector.broadcast %8 : vector<2x1x64xf32> to vector<2x64x64xf32>
    %17 = arith.subf %4, %16 : vector<2x64x64xf32>
    %cst_8 = arith.constant 9.99999974E-6 : f32
    %18 = vector.broadcast %cst_8 : f32 to vector<2x1x64xf32>
    %19 = arith.addf %15, %18 : vector<2x1x64xf32>
    %20 = math.rsqrt %19 : vector<2x1x64xf32>
    %21 = vector.broadcast %20 : vector<2x1x64xf32> to vector<2x64x64xf32>
    %22 = arith.mulf %17, %21 : vector<2x64x64xf32>
    %cst_9 = arith.constant 0.000000e+00 : f32
    %23 = vector.broadcast %cst_9 : f32 to vector<2x64x64xf32>
    %24 = arith.maximumf %22, %23 : vector<2x64x64xf32>
    %25 = arith.truncf %24 : vector<2x64x64xf32> to vector<2x64x64xbf16>
    %c0_10 = arith.constant 0 : index
    %c0_11 = arith.constant 0 : index
    %c0_12 = arith.constant 0 : index
    %26 = vector.load %arg3[%c0_10, %c0_11, %c0_12] : memref<2x64x64xbf16, #tpu.memory_space<vmem>>, vector<2x64x64xbf16>
    tpu.vector_store %arg3[%c0_10, %c0_11, %c0_12], %25 {strides = array<i32>} : memref<2x64x64xbf16, #tpu.memory_space<vmem>>, vector<2x64x64xbf16>,
    return
  }
  func.func @transform_0(%arg0: i32) -> (i32, i32, i32) {
    %c0_i32 = arith.constant 0 : i32
    %c0_i32_0 = arith.constant 0 : i32
    %c0_i32_1 = arith.constant 0 : i32
    return %arg0, %c0_i32, %c0_i32_0 : i32, i32, i32
  }
  func.func @transform_1(%arg0: i32) -> (i32, i32) {
    %c0_i32 = arith.constant 0 : i32
    %c0_i32_0 = arith.constant 0 : i32
    %c0_i32_1 = arith.constant 0 : i32
    return %c0_i32, %c0_i32_0 : i32, i32
  }
  func.func @transform_2(%arg0: i32) -> (i32, i32, i32) {
    %c0_i32 = arith.constant 0 : i32
    %c0_i32_0 = arith.constant 0 : i32
    %c0_i32_1 = arith.constant 0 : i32
    return %arg0, %c0_i32, %c0_i32_0 : i32, i32, i32
  }
}

module attributes {stable_mosaic.version = 11 : i64} {
  func.func @_conv_in_relu_kernel(%arg0: i32, %arg1: memref<2x16x1024xbf16, #tpu.memory_space<vmem>>, %arg2: memref<1024x128xbf16, #tpu.memory_space<vmem>>, %arg3: memref<2x16x128xbf16, #tpu.memory_space<vmem>>) attributes {dimension_semantics = [#tpu.dimension_semantics<parallel>], iteration_bounds = array<i64: 1>, scalar_prefetch = 0 : i64, scratch_operands = 0 : i64, tpu.core_type = #tpu.core_type<tc>, window_params = [{transform_indices = @transform_0, window_bounds = array<i64: 2, 16, 1024>}, {pipeline_mode = #tpu.pipeline_mode<synchronous>, transform_indices = @transform_1, window_bounds = array<i64: 1024, 128>}, {transform_indices = @transform_2, window_bounds = array<i64: 2, 16, 128>}]} {
    %c0 = arith.constant 0 : index
    %c0_0 = arith.constant 0 : index
    %c0_1 = arith.constant 0 : index
    %0 = vector.load %arg1[%c0, %c0_0, %c0_1] : memref<2x16x1024xbf16, #tpu.memory_space<vmem>>, vector<2x16x1024xbf16>
    %1 = vector.shape_cast %0 : vector<2x16x1024xbf16> to vector<32x1024xbf16>
    %c0_2 = arith.constant 0 : index
    %c0_3 = arith.constant 0 : index
    %2 = vector.load %arg2[%c0_2, %c0_3] : memref<1024x128xbf16, #tpu.memory_space<vmem>>, vector<1024x128xbf16>
    %cst = arith.constant dense<0.000000e+00> : vector<32x128xf32>
    %3 = tpu.matmul %1, %2, %cst {dimension_numbers = #tpu.dot_dimension_numbers<[1], [0], [0], [1], [0, 0, 1, 1], [], []>} : vector<32x1024xbf16>, vector<1024x128xbf16>, vector<32x128xf32> -> vector<32x128xf32>
    %4 = vector.shape_cast %3 : vector<32x128xf32> to vector<2x16x128xf32>
    %cst_4 = arith.constant dense<0.000000e+00> : vector<2x128xf32>
    %5 = vector.multi_reduction <add>, %4, %cst_4 [1] : vector<2x16x128xf32> to vector<2x128xf32>
    %6 = vector.shape_cast %5 : vector<2x128xf32> to vector<2x1x128xf32>
    %cst_5 = arith.constant 1.600000e+01 : f32
    %7 = vector.broadcast %cst_5 : f32 to vector<2x1x128xf32>
    %8 = arith.divf %6, %7 : vector<2x1x128xf32>
    %9 = arith.mulf %4, %4 : vector<2x16x128xf32>
    %cst_6 = arith.constant dense<0.000000e+00> : vector<2x128xf32>
    %10 = vector.multi_reduction <add>, %9, %cst_6 [1] : vector<2x16x128xf32> to vector<2x128xf32>
    %11 = vector.shape_cast %10 : vector<2x128xf32> to vector<2x1x128xf32>
    %cst_7 = arith.constant 1.600000e+01 : f32
    %12 = vector.broadcast %cst_7 : f32 to vector<2x1x128xf32>
    %13 = arith.divf %11, %12 : vector<2x1x128xf32>
    %14 = arith.mulf %8, %8 : vector<2x1x128xf32>
    %15 = arith.subf %13, %14 : vector<2x1x128xf32>
    %16 = vector.broadcast %8 : vector<2x1x128xf32> to vector<2x16x128xf32>
    %17 = arith.subf %4, %16 : vector<2x16x128xf32>
    %cst_8 = arith.constant 9.99999974E-6 : f32
    %18 = vector.broadcast %cst_8 : f32 to vector<2x1x128xf32>
    %19 = arith.addf %15, %18 : vector<2x1x128xf32>
    %20 = math.rsqrt %19 : vector<2x1x128xf32>
    %21 = vector.broadcast %20 : vector<2x1x128xf32> to vector<2x16x128xf32>
    %22 = arith.mulf %17, %21 : vector<2x16x128xf32>
    %cst_9 = arith.constant 0.000000e+00 : f32
    %23 = vector.broadcast %cst_9 : f32 to vector<2x16x128xf32>
    %24 = arith.maximumf %22, %23 : vector<2x16x128xf32>
    %25 = arith.truncf %24 : vector<2x16x128xf32> to vector<2x16x128xbf16>
    %c0_10 = arith.constant 0 : index
    %c0_11 = arith.constant 0 : index
    %c0_12 = arith.constant 0 : index
    %26 = vector.load %arg3[%c0_10, %c0_11, %c0_12] : memref<2x16x128xbf16, #tpu.memory_space<vmem>>, vector<2x16x128xbf16>
    tpu.vector_store %arg3[%c0_10, %c0_11, %c0_12], %25 {strides = array<i32>} : memref<2x16x128xbf16, #tpu.memory_space<vmem>>, vector<2x16x128xbf16>,
    return
  }
  func.func @transform_0(%arg0: i32) -> (i32, i32, i32) {
    %c0_i32 = arith.constant 0 : i32
    %c0_i32_0 = arith.constant 0 : i32
    %c0_i32_1 = arith.constant 0 : i32
    return %arg0, %c0_i32, %c0_i32_0 : i32, i32, i32
  }
  func.func @transform_1(%arg0: i32) -> (i32, i32) {
    %c0_i32 = arith.constant 0 : i32
    %c0_i32_0 = arith.constant 0 : i32
    %c0_i32_1 = arith.constant 0 : i32
    return %c0_i32, %c0_i32_0 : i32, i32
  }
  func.func @transform_2(%arg0: i32) -> (i32, i32, i32) {
    %c0_i32 = arith.constant 0 : i32
    %c0_i32_0 = arith.constant 0 : i32
    %c0_i32_1 = arith.constant 0 : i32
    return %arg0, %c0_i32, %c0_i32_0 : i32, i32, i32
  }
}

</mosaic_0001>

<bundles_post_ra>
// kernel: encoder_forward.3
= control target key start
LH: loop header
LB: loop body
LE: loop exit
PB: predicated region body
PF: predicated region fallthrough
CT: control target
= control target key end

     0   :  { %s1210_s9 = smov 0   ;;  %s1731_s0 = inlined_call_operand.vmem [shape: bf16[2,256,36], index: 0, kind: input, shape index: {}]   ;;  %s1732_s1 = inlined_call_operand.vmem [shape: bf16[36,32], index: 1, kind: input, shape index: {}]   ;;  %s1733_s2 = inlined_call_operand.vmem [shape: bf16[2,256,32], index: 2, kind: output, shape index: {}]  }
   0x1 LB: > { %s981_s10 = sadd.s32 4294967295, %s1193_s9   ;;  %p985_p0 = scmp.ge.s32.totalorder %s1193_s9, 1  ;;  %s1193_s9 = sphi %s1210_s9, %s12_s9  }
   0x2   : > { %p112_p1 = scmp.lt.s32.totalorder %s1193_s9, 3 }
   0x4   : > { %p113_p2 = pnand %p985_p0, %p112_p1 }
   0x5   : > { %p134_p3 = scmp.lt.s32.totalorder (!%p113_p2), %s981_s10, 1 }
   0x6   : > { %116 = sbr.rel (%p113_p2) target bundleno = 355 (0x163), region = 28 }
   0xb   : > { %v1166_v0 = vld [vmem:[%s1732_s1 + $0x10] ss:$0 sps:$4 sm:$0x33]   ;;  %vm326_vm0 = vcmask 1041408   ;;  %v1167_v1 = vld [vmem:[%s1732_s1 + $0x8] sm:$0xff]   ;;  %s1735_s10 = smov (!%p134_p3, %s981_s10), 1 }
   0xc   : > { %1156 = vmatprep.subr.msk.bf16.mxu0 %vm326_vm0, %v1166_v0  ;;  %v328_v2 = vsel %vm326_vm0, %v1166_v0, 0  ;;  %1157 = vmatprep.subr.msk.bf16.mxu1 %vm326_vm0, %v1166_v0  ;;  %v1168_v3 = vld [vmem:[%s1732_s1] sm:$0xff]   ;;  %s1059_s17 = sshll.u32 %s1735_s10, 7  ;;  %vm277_vm1 = vcmask 293888   ;;  %vm491_vm2 = vcmask 261120   ;;  %vm893_vm3 = vcmask 257024  }
   0xd   : > { %1113 = vmatpush3.bf16.msra.mxu0 %v328_v2  ;;  %1153 = vmatpush3.bf16.msra.mxu1 %v328_v2  ;;  %s1235_s20 = scalar_lea.vmem %s1731_s0, %s1059_s17  ;;  %s1658_s23 = scalar_lea.vmem %s1733_s2, %s1059_s17 }
   0xe   : > { %1114 = vmatprep.subr.bf16.mxu0 %v1167_v1  ;;  %1151 = vmatprep.subr.bf16.mxu1 %v1167_v1  ;;  %v1169_v4 = vld [vmem:[%s1235_s20] sm:$0xff]   ;;  %v1170_v5 = vld [vmem:[%s1235_s20 + $0x8] sm:$0xff]   ;;  %v1171_v6 = vld [vmem:[%s1235_s20 + $0x10] sm:$0xff]  }
   0xf   : > { %1118 = vmatprep.mubr.msk.bf16.mxu0 %vm277_vm1, %v1169_v4  ;;  %v1177_v7 = vld [vmem:[%s1235_s20 + $0x40] sm:$0xff]   ;;  %v1178_v8 = vld [vmem:[%s1235_s20 + $0x48] sm:$0xff]   ;;  %v1179_v9 = vld [vmem:[%s1235_s20 + $0x50] sm:$0xff]  }
  0x10   : > { %1134 = vmatprep.mubr.msk.bf16.mxu1 %vm277_vm1, %v1177_v7  ;;  %v1172_v10 = vld [vmem:[%s1235_s20 + $0x18] sm:$0xff]   ;;  %v1173_v11 = vld [vmem:[%s1235_s20 + $0x20] sm:$0xff]   ;;  %v1174_v14 = vld [vmem:[%s1235_s20 + $0x28] sm:$0xff]  }
  0x11   : > { %1115 = vmatpush3.bf16.msra.mxu0 %v1167_v1  ;;  %1154 = vmatpush3.bf16.msra.mxu1 %v1167_v1  ;;  %v1180_v12 = vld [vmem:[%s1235_s20 + $0x58] sm:$0xff]   ;;  %v1181_v13 = vld [vmem:[%s1235_s20 + $0x60] sm:$0xff]   ;;  %v1175_v15 = vld [vmem:[%s1235_s20 + $0x30] sm:$0xff]  }
  0x12   : > { %1116 = vmatprep.subr.bf16.mxu0 %v1168_v3  ;;  %1152 = vmatprep.subr.bf16.mxu1 %v1168_v3  ;;  %v1182_v16 = vld [vmem:[%s1235_s20 + $0x68] sm:$0xff]   ;;  %v1183_v17 = vld [vmem:[%s1235_s20 + $0x70] sm:$0xff]   ;;  %v1176_v18 = vld [vmem:[%s1235_s20 + $0x38] sm:$0xff]  }
  0x13   : > { %v1184_v19 = vld [vmem:[%s1235_s20 + $0x78] sm:$0xff]  }
  0x15   : > { %1117 = vmatpush3.bf16.msra.mxu0 %v1168_v3  ;;  %1155 = vmatpush3.bf16.msra.mxu1 %v1168_v3 }
  0x18   : > { %1119 = vmatmul.mubr.msk.bf16.vlgmr.msra.gmra.mxu0 %vm277_vm1, %v1170_v5  ;;  %1135 = vmatmul.mubr.msk.bf16.vlgmr.msra.gmra.mxu1 %vm277_vm1, %v1178_v8 }
  0x19   : > { %1122 = vmatprep.mubr.msk.bf16.mxu0 %vm277_vm1, %v1171_v6  ;;  %1138 = vmatprep.mubr.msk.bf16.mxu1 %vm277_vm1, %v1179_v9 }
  0x20   : > { %1123 = vmatmul.mubr.msk.bf16.gmra.mxu0 %vm277_vm1, %v1172_v10  ;;  %1139 = vmatmul.mubr.msk.bf16.gmra.mxu1 %vm277_vm1, %v1180_v12 }
  0x21   : > { %1126 = vmatprep.mubr.msk.bf16.mxu0 %vm277_vm1, %v1173_v11  ;;  %1142 = vmatprep.mubr.msk.bf16.mxu1 %vm277_vm1, %v1181_v13 }
  0x28   : > { %1127 = vmatmul.mubr.msk.bf16.gmra.mxu0 %vm277_vm1, %v1174_v14  ;;  %1143 = vmatmul.mubr.msk.bf16.gmra.mxu1 %vm277_vm1, %v1182_v16 }
  0x29   : > { %1130 = vmatprep.mubr.msk.bf16.mxu0 %vm277_vm1, %v1175_v15  ;;  %1146 = vmatprep.mubr.msk.bf16.mxu1 %vm277_vm1, %v1183_v17 }
  0x30   : > { %1131 = vmatmul.mubr.msk.bf16.gmra.mxu0 %vm277_vm1, %v1176_v18  ;;  %1147 = vmatmul.mubr.msk.bf16.gmra.mxu1 %vm277_vm1, %v1184_v19 }
  0xd8   : > { %v1269_v20 = vpop.f32.mrf.mxu0  ;;  %v1275_v23 = vpop.f32.mrf.mxu1 }
  0xd9   : > { %v565_v27 = vmul.f32 %v1269_v20, %v1269_v20  ;;  %v495_v34 = vsel %vm491_vm2, %v1269_v20, 0.0 }
  0xda   : > { %v1271_v21 = vpop.f32.mrf.mxu0  ;;  %v1281_v26 = vpop.f32.mrf.mxu1 }
  0xdb   : > { %v563_v24 = vmul.f32 %v1271_v21, %v1271_v21  ;;  %v492_v28 = vsel %vm491_vm2, %v1271_v21, 0.0  ;;  %v598_v42 = vsel %vm491_vm2, %v565_v27, 0.0 }
  0xdc   : > { %v1273_v22 = vpop.f32.mrf.mxu0  ;;  %v1293_v33 = vpop.f32.mrf.mxu1 }
  0xdd   : > { %v595_v35 = vsel %vm491_vm2, %v563_v24, 0.0  ;;  %v566_v36 = vmul.f32 %v1273_v22, %v1273_v22  ;;  %v497_v43 = vsel %vm491_vm2, %v1273_v22, 0.0 }
  0xde   : > { %v1279_v25 = vpop.f32.mrf.mxu0  ;;  %v1303_v41 = vpop.f32.mrf.mxu1 }
  0xdf   : > { %v493_v29 = vsel %vm491_vm2, %v1279_v25, 0.0  ;;  %v564_v30 = vmul.f32 %v1279_v25, %v1279_v25  ;;  %v600_v48 = vsel %vm491_vm2, %v566_v36, 0.0 }
  0xe0   : > { %v494_v31 = vadd.f32 %v493_v29, %v492_v28  ;;  %v1291_v32 = vpop.f32.mrf.mxu0  ;;  %v1317_v53 = vpop.f32.mrf.mxu1 }
  0xe1   : > { %v596_v37 = vsel %vm491_vm2, %v564_v30, 0.0  ;;  %v569_v54 = vmul.f32 %v1291_v32, %v1291_v32  ;;  %v503_v61 = vsel %vm491_vm2, %v1291_v32, 0.0 }
  0xe2   : > { %v496_v38 = vadd.f32 %v495_v34, %v494_v31  ;;  %v597_v39 = vadd.f32 %v596_v37, %v595_v35  ;;  %v1301_v40 = vpop.f32.mrf.mxu0  ;;  %v1335_v3 = vpop.f32.mrf.mxu1 }
  0xe3   : > { %v567_v44 = vmul.f32 %v1301_v40, %v1301_v40  ;;  %v499_v49 = vsel %vm491_vm2, %v1301_v40, 0.0  ;;  %v606_v4 = vsel %vm491_vm2, %v569_v54, 0.0 }
  0xe4   : > { %v599_v45 = vadd.f32 %v598_v42, %v597_v39  ;;  %v498_v46 = vadd.f32 %v497_v43, %v496_v38  ;;  %v1310_v47 = vpop.f32.mrf.mxu0  ;;  %v1349_v15 = vpop.f32.mrf.mxu1 }
  0xe5   : > { %v602_v55 = vsel %vm491_vm2, %v567_v44, 0.0  ;;  %v570_v62 = vmul.f32 %v1310_v47, %v1310_v47  ;;  %v505_v5 = vsel %vm491_vm2, %v1310_v47, 0.0 }
  0xe6   : > { %v500_v50 = vadd.f32 %v499_v49, %v498_v46  ;;  %v601_v51 = vadd.f32 %v600_v48, %v599_v45  ;;  %v1315_v52 = vpop.f32.mrf.mxu0  ;;  %v1367_v37 = vpop.f32.mrf.mxu1 }
  0xe7   : > { %v501_v56 = vsel %vm491_vm2, %v1315_v52, 0.0  ;;  %v568_v57 = vmul.f32 %v1315_v52, %v1315_v52  ;;  %v608_v10 = vsel %vm491_vm2, %v570_v62, 0.0 }
  0xe8   : > { %v603_v58 = vadd.f32 %v602_v55, %v601_v51  ;;  %v502_v59 = vadd.f32 %v501_v56, %v500_v50  ;;  %v1326_v60 = vpop.f32.mrf.mxu0  ;;  %v1381_v54 = vpop.f32.mrf.mxu1 }
  0xe9   : > { %v604_v63 = vsel %vm491_vm2, %v568_v57, 0.0  ;;  %v573_v16 = vmul.f32 %v1326_v60, %v1326_v60  ;;  %v511_v29 = vsel %vm491_vm2, %v1326_v60, 0.0 }
  0xea   : > { %v504_v0 = vadd.f32 %v503_v61, %v502_v59  ;;  %v605_v1 = vadd.f32 %v604_v63, %v603_v58  ;;  %v1333_v2 = vpop.f32.mrf.mxu0 }
  0xeb   : > { %v571_v6 = vmul.f32 %v1333_v2, %v1333_v2  ;;  %v507_v11 = vsel %vm491_vm2, %v1333_v2, 0.0  ;;  %v614_v38 = vsel %vm491_vm2, %v573_v16, 0.0  ;;  %v580_v16 = vmul.f32 %v1303_v41, %v1303_v41 }
  0xec   : > { %v607_v7 = vadd.f32 %v606_v4, %v605_v1  ;;  %v506_v8 = vadd.f32 %v505_v5, %v504_v0  ;;  %v1342_v9 = vpop.f32.mrf.mxu0  ;;  %v1395_v5 = vpop.f32.mrf.mxu1 }
  0xed   : > { %v610_v17 = vsel %vm491_vm2, %v571_v6, 0.0  ;;  %v574_v30 = vmul.f32 %v1342_v9, %v1342_v9  ;;  %v513_v39 = vsel %vm491_vm2, %v1342_v9, 0.0 }
  0xee   : > { %v508_v12 = vadd.f32 %v507_v11, %v506_v8  ;;  %v609_v13 = vadd.f32 %v608_v10, %v607_v7  ;;  %v1347_v14 = vpop.f32.mrf.mxu0  ;;  %v579_v8 = vmul.f32 %v1281_v26, %v1281_v26 }
  0xef   : > { %v509_v18 = vsel %vm491_vm2, %v1347_v14, 0.0  ;;  %v572_v19 = vmul.f32 %v1347_v14, %v1347_v14  ;;  %v616_v46 = vsel %vm491_vm2, %v574_v30, 0.0 }
  0xf0   : > { %v611_v24 = vadd.f32 %v610_v17, %v609_v13  ;;  %v510_v27 = vadd.f32 %v509_v18, %v508_v12  ;;  %v1358_v28 = vpop.f32.mrf.mxu0  ;;  %v523_v13 = vsel %vm491_vm2, %v1281_v26, 0.0 }
  0xf1   : > { %v612_v31 = vsel %vm491_vm2, %v572_v19, 0.0  ;;  %v577_v55 = vmul.f32 %v1358_v28, %v1358_v28  ;;  %v519_v62 = vsel %vm491_vm2, %v1358_v28, 0.0  ;;  %v1407_v19 = vpop.f32.mrf.mxu1 }
  0xf2   : > { %v512_v34 = vadd.f32 %v511_v29, %v510_v27  ;;  %v613_v35 = vadd.f32 %v612_v31, %v611_v24  ;;  %v1365_v36 = vpop.f32.mrf.mxu0  ;;  %v581_v24 = vmul.f32 %v1275_v23, %v1275_v23  ;;  %v626_v27 = vsel %vm491_vm2, %v579_v8, 0.0 }
  0xf3   : > { %v575_v42 = vmul.f32 %v1365_v36, %v1365_v36  ;;  %v515_v48 = vsel %vm491_vm2, %v1365_v36, 0.0  ;;  %v622_v6 = vsel %vm491_vm2, %v577_v55, 0.0  ;;  %v525_v29 = vsel %vm491_vm2, %v1303_v41, 0.0 }
  0xf4   : > { %v615_v43 = vadd.f32 %v614_v38, %v613_v35  ;;  %v514_v44 = vadd.f32 %v513_v39, %v512_v34  ;;  %v1374_v45 = vpop.f32.mrf.mxu0  ;;  %v527_v34 = vsel %vm491_vm2, %v1275_v23, 0.0  ;;  %v582_v35 = vmul.f32 %v1293_v33, %v1293_v33 }
  0xf5   : > { %v618_v56 = vsel %vm491_vm2, %v575_v42, 0.0  ;;  %v578_v63 = vmul.f32 %v1374_v45, %v1374_v45  ;;  %v521_v7 = vsel %vm491_vm2, %v1374_v45, 0.0  ;;  %v628_v38 = vsel %vm491_vm2, %v580_v16, 0.0 }
  0xf6   : > { %v516_v49 = vadd.f32 %v515_v48, %v514_v44  ;;  %v617_v50 = vadd.f32 %v616_v46, %v615_v43  ;;  %v1379_v51 = vpop.f32.mrf.mxu0  ;;  %v1419_v43 = vpop.f32.mrf.mxu1  ;;  %v630_v44 = vsel %vm491_vm2, %v581_v24, 0.0  ;;  %v529_v46 = vsel %vm491_vm2, %v1293_v33, 0.0 }
  0xf7   : > { %v517_v57 = vsel %vm491_vm2, %v1379_v51, 0.0  ;;  %v576_v58 = vmul.f32 %v1379_v51, %v1379_v51  ;;  %v624_v12 = vsel %vm491_vm2, %v578_v63, 0.0  ;;  %v583_v48 = vmul.f32 %v1335_v3, %v1335_v3 }
  0xf8   : > { %v619_v59 = vadd.f32 %v618_v56, %v617_v50  ;;  %v518_v61 = vadd.f32 %v517_v57, %v516_v49  ;;  %v632_v55 = vsel %vm491_vm2, %v582_v35, 0.0  ;;  %v531_v56 = vsel %vm491_vm2, %v1335_v3, 0.0 }
  0xf9   : > { %v620_v0 = vsel %vm491_vm2, %v576_v58, 0.0  ;;  %v584_v57 = vmul.f32 %v1367_v37, %v1367_v37  ;;  %v634_v63 = vsel %vm491_vm2, %v583_v48, 0.0  ;;  %v537_v16 = vsel %vm491_vm2, %v1349_v15, 0.0 }
  0xfa   : > { %v520_v1 = vadd.f32 %v519_v62, %v518_v61  ;;  %v621_v4 = vadd.f32 %v620_v0, %v619_v59  ;;  %v1431_v61 = vpop.f32.mrf.mxu1  ;;  %v585_v62 = vmul.f32 %v1317_v53, %v1317_v53  ;;  %v533_v0 = vsel %vm491_vm2, %v1367_v37, 0.0 }
  0xfb   : > { %v636_v8 = vsel %vm491_vm2, %v584_v57, 0.0  ;;  %v543_v48 = vsel %vm491_vm2, %v1381_v54, 0.0 }
  0xfc   : > { %v522_v10 = vadd.f32 %v521_v7, %v520_v1  ;;  %v623_v11 = vadd.f32 %v622_v6, %v621_v4  ;;  %v535_v6 = vsel %vm491_vm2, %v1317_v53, 0.0  ;;  %v586_v7 = vmul.f32 %v1349_v15, %v1349_v15 }
  0xfe   : > { %v625_v17 = vadd.f32 %v624_v12, %v623_v11  ;;  %v524_v18 = vadd.f32 %v523_v13, %v522_v10  ;;  %v1443_v12 = vpop.f32.mrf.mxu1  ;;  %v638_v13 = vsel %vm491_vm2, %v585_v62, 0.0 }
  0xff   : > { %v591_v62 = vmul.f32 %v1443_v12, %v1443_v12 }
 0x100   : > { %v526_v30 = vadd.f32 %v525_v29, %v524_v18  ;;  %v627_v31 = vadd.f32 %v626_v27, %v625_v17  ;;  %v587_v17 = vmul.f32 %v1395_v5, %v1395_v5  ;;  %v640_v27 = vsel %vm491_vm2, %v586_v7, 0.0  ;;  %v1455_v35 = vpop.f32.mrf.mxu1 }
 0x101   : > { %v539_v29 = vsel %vm491_vm2, %v1395_v5, 0.0 }
 0x102   : > { %v528_v39 = vadd.f32 %v527_v34, %v526_v30  ;;  %v629_v42 = vadd.f32 %v628_v38, %v627_v31  ;;  %v588_v30 = vmul.f32 %v1419_v43, %v1419_v43  ;;  %v589_v38 = vmul.f32 %v1381_v54, %v1381_v54  ;;  %v1467_v57 = vpop.f32.mrf.mxu1 }
 0x104   : > { %v631_v49 = vadd.f32 %v630_v44, %v629_v42  ;;  %v530_v50 = vadd.f32 %v529_v46, %v528_v39  ;;  %v642_v39 = vsel %vm491_vm2, %v587_v17, 0.0  ;;  %v541_v42 = vsel %vm491_vm2, %v1419_v43, 0.0 }
 0x106   : > { %v532_v58 = vadd.f32 %v531_v56, %v530_v50  ;;  %v633_v59 = vadd.f32 %v632_v55, %v631_v49  ;;  %v590_v49 = vmul.f32 %v1407_v19, %v1407_v19  ;;  %v644_v50 = vsel %vm491_vm2, %v588_v30, 0.0 }
 0x108   : > { %v635_v1 = vadd.f32 %v634_v63, %v633_v59  ;;  %v534_v4 = vadd.f32 %v533_v0, %v532_v58  ;;  %v646_v58 = vsel %vm491_vm2, %v589_v38, 0.0  ;;  %v545_v59 = vsel %vm491_vm2, %v1407_v19, 0.0 }
 0x10a   : > { %v536_v10 = vadd.f32 %v535_v6, %v534_v4  ;;  %v637_v11 = vadd.f32 %v636_v8, %v635_v1  ;;  %v648_v1 = vsel %vm491_vm2, %v590_v49, 0.0  ;;  %v547_v4 = vsel %vm491_vm2, %v1443_v12, 0.0 }
 0x10b   : > { %v592_v6 = vmul.f32 %v1467_v57, %v1467_v57 }
 0x10c   : > { %v639_v18 = vadd.f32 %v638_v13, %v637_v11  ;;  %v538_v24 = vadd.f32 %v537_v16, %v536_v10  ;;  %v593_v10 = vmul.f32 %v1431_v61, %v1431_v61  ;;  %v650_v11 = vsel %vm491_vm2, %v591_v62, 0.0 }
 0x10d   : > { %v549_v13 = vsel %vm491_vm2, %v1467_v57, 0.0 }
 0x10e   : > { %v540_v31 = vadd.f32 %v539_v29, %v538_v24  ;;  %v641_v34 = vadd.f32 %v640_v27, %v639_v18  ;;  %v551_v18 = vsel %vm491_vm2, %v1431_v61, 0.0  ;;  %v594_v24 = vmul.f32 %v1455_v35, %v1455_v35 }
 0x10f   : > { %v652_v27 = vsel %vm491_vm2, %v592_v6, 0.0 }
 0x110   : > { %v643_v44 = vadd.f32 %v642_v39, %v641_v34  ;;  %v542_v46 = vadd.f32 %v541_v42, %v540_v31  ;;  %v654_v31 = vsel %vm491_vm2, %v593_v10, 0.0  ;;  %v553_v34 = vsel %vm491_vm2, %v1455_v35, 0.0 }
 0x111   : > { %v656_v42 = vsel %vm491_vm2, %v594_v24, 0.0 }
 0x112   : > { %v544_v55 = vadd.f32 %v543_v48, %v542_v46  ;;  %v645_v56 = vadd.f32 %v644_v50, %v643_v44 }
 0x114   : > { %v647_v63 = vadd.f32 %v646_v58, %v645_v56  ;;  %v546_v0 = vadd.f32 %v545_v59, %v544_v55 }
 0x116   : > { %v548_v7 = vadd.f32 %v547_v4, %v546_v0  ;;  %v649_v8 = vadd.f32 %v648_v1, %v647_v63 }
 0x118   : > { %v651_v16 = vadd.f32 %v650_v11, %v649_v8  ;;  %v550_v17 = vadd.f32 %v549_v13, %v548_v7 }
 0x11a   : > { %v552_v29 = vadd.f32 %v551_v18, %v550_v17  ;;  %v653_v30 = vadd.f32 %v652_v27, %v651_v16 }
 0x11c   : > { %v554_v38 = vadd.f32 %v553_v34, %v552_v29  ;;  %v655_v39 = vadd.f32 %v654_v31, %v653_v30 }
 0x11e   : > { %v555_v44 = vrot.slane %v554_v38, 4  ;;  %v657_v46 = vadd.f32 %v656_v42, %v655_v39 }
 0x120   : > { %v556_v48 = vadd.f32 %v555_v44, %v554_v38  ;;  %v658_v49 = vrot.slane %v657_v46, 4 }
 0x122   : > { %v557_v50 = vrot.slane %v556_v48, 2  ;;  %v659_v55 = vadd.f32 %v658_v49, %v657_v46 }
 0x124   : > { %v558_v56 = vadd.f32 %v557_v50, %v556_v48  ;;  %v660_v58 = vrot.slane %v659_v55, 2 }
 0x126   : > { %v559_v59 = vrot.slane %v558_v56, 1  ;;  %v661_v62 = vadd.f32 %v660_v58, %v659_v55 }
 0x128   : > { %v560_v63 = vadd.f32 %v559_v59, %v558_v56  ;;  %v662_v0 = vrot.slane %v661_v62, 1 }
 0x12a   : > { %v1493_v1 = vmul.f32 0.00390625, %v560_v63  ;;  %v663_v4 = vadd.f32 %v662_v0, %v661_v62 }
 0x12c   : > { %v664_v6 = vmul.f32 0.00390625, %v663_v4  ;;  %v665_v7 = vmul.f32 %v1493_v1, %v1493_v1  ;;  %v667_v11 = vsub.f32 %v1271_v21, %v1493_v1  ;;  %v668_v13 = vsub.f32 %v1279_v25, %v1493_v1 }
 0x12d   : > { %v669_v16 = vsub.f32 %v1269_v20, %v1493_v1  ;;  %v670_v17 = vsub.f32 %v1273_v22, %v1493_v1  ;;  %v671_v18 = vsub.f32 %v1301_v40, %v1493_v1  ;;  %v672_v24 = vsub.f32 %v1315_v52, %v1493_v1 }
 0x12e   : > { %v666_v8 = vsub.f32 %v664_v6, %v665_v7  ;;  %v673_v27 = vsub.f32 %v1291_v32, %v1493_v1  ;;  %v674_v21 = vsub.f32 %v1310_v47, %v1493_v1  ;;  %v675_v25 = vsub.f32 %v1333_v2, %v1493_v1 }
 0x12f   : > { %v676_v20 = vsub.f32 %v1347_v14, %v1493_v1  ;;  %v677_v22 = vsub.f32 %v1326_v60, %v1493_v1  ;;  %v678_v40 = vsub.f32 %v1342_v9, %v1493_v1  ;;  %v679_v52 = vsub.f32 %v1365_v36, %v1493_v1 }
 0x130   : > { %v699_v10 = vadd.f32 1e-05, %v666_v8  ;;  %v680_v32 = vsub.f32 %v1379_v51, %v1493_v1  ;;  %v681_v47 = vsub.f32 %v1358_v28, %v1493_v1  ;;  %v682_v2 = vsub.f32 %v1374_v45, %v1493_v1 }
 0x131   : > { %v683_v14 = vsub.f32 %v1281_v26, %v1493_v1  ;;  %v684_v60 = vsub.f32 %v1303_v41, %v1493_v1  ;;  %v685_v9 = vsub.f32 %v1275_v23, %v1493_v1  ;;  %v686_v36 = vsub.f32 %v1293_v33, %v1493_v1 }
 0x132   : > { %1185 = vrsqrt.f32 %v699_v10  ;;  %v687_v51 = vsub.f32 %v1335_v3, %v1493_v1  ;;  %v688_v28 = vsub.f32 %v1367_v37, %v1493_v1  ;;  %v689_v45 = vsub.f32 %v1317_v53, %v1493_v1 }
 0x133   : > { %v690_v26 = vsub.f32 %v1349_v15, %v1493_v1  ;;  %v691_v41 = vsub.f32 %v1395_v5, %v1493_v1  ;;  %v692_v23 = vsub.f32 %v1419_v43, %v1493_v1  ;;  %v693_v33 = vsub.f32 %v1381_v54, %v1493_v1 }
 0x134   : > { %v694_v3 = vsub.f32 %v1407_v19, %v1493_v1  ;;  %v695_v37 = vsub.f32 %v1443_v12, %v1493_v1  ;;  %v696_v53 = vsub.f32 %v1467_v57, %v1493_v1  ;;  %v697_v15 = vsub.f32 %v1431_v61, %v1493_v1 }
 0x135   : > { %v698_v5 = vsub.f32 %v1455_v35, %v1493_v1 }
 0x13f   : > { %v1186_v29 = vpop.eup %1185 }
 0x140   : > { %v1561_v43 = vmul.f32 %v1186_v29, %v667_v11  ;;  %v1563_v30 = vmul.f32 %v1186_v29, %v668_v13  ;;  %v1565_v54 = vmul.f32 %v1186_v29, %v669_v16  ;;  %v1567_v19 = vmul.f32 %v1186_v29, %v670_v17 }
 0x141   : > { %v1569_v31 = vmul.f32 %v1186_v29, %v671_v18  ;;  %v1571_v12 = vmul.f32 %v1186_v29, %v672_v24  ;;  %v1573_v34 = vmul.f32 %v1186_v29, %v673_v27  ;;  %v1575_v57 = vmul.f32 %v1186_v29, %v674_v21 }
 0x142   : > { %v1577_v61 = vmul.f32 %v1186_v29, %v675_v25  ;;  %v1579_v38 = vmul.f32 %v1186_v29, %v676_v20  ;;  %v1581_v35 = vmul.f32 %v1186_v29, %v677_v22  ;;  %v1583_v39 = vmul.f32 %v1186_v29, %v678_v40 }
 0x143   : > { %v1585_v42 = vmul.f32 %v1186_v29, %v679_v52  ;;  %v1587_v44 = vmul.f32 %v1186_v29, %v680_v32  ;;  %v1589_v46 = vmul.f32 %v1186_v29, %v681_v47  ;;  %v1591_v48 = vmul.f32 %v1186_v29, %v682_v2 }
 0x144   : > { %v1593_v49 = vmul.f32 %v1186_v29, %v683_v14  ;;  %v1595_v50 = vmul.f32 %v1186_v29, %v684_v60  ;;  %v1597_v55 = vmul.f32 %v1186_v29, %v685_v9  ;;  %v1599_v56 = vmul.f32 %v1186_v29, %v686_v36 }
 0x145   : > { %v1601_v58 = vmul.f32 %v1186_v29, %v687_v51  ;;  %v1603_v59 = vmul.f32 %v1186_v29, %v688_v28  ;;  %v1605_v62 = vmul.f32 %v1186_v29, %v689_v45  ;;  %v1607_v63 = vmul.f32 %v1186_v29, %v690_v26 }
 0x146   : > { %v1609_v0 = vmul.f32 %v1186_v29, %v691_v41  ;;  %v1611_v1 = vmul.f32 %v1186_v29, %v692_v23  ;;  %v1613_v4 = vmul.f32 %v1186_v29, %v693_v33  ;;  %v1615_v6 = vmul.f32 %v1186_v29, %v694_v3 }
 0x147   : > { %v1617_v7 = vmul.f32 %v1186_v29, %v695_v37  ;;  %v1619_v8 = vmul.f32 %v1186_v29, %v696_v53  ;;  %v1621_v10 = vmul.f32 %v1186_v29, %v697_v15  ;;  %v1623_v11 = vmul.f32 %v1186_v29, %v698_v5 }
 0x148   : > { %v733_v13 = vmax.f32 %v1561_v43, 0.0  ;;  %v734_v16 = vmax.f32 %v1563_v30, 0.0  ;;  %v735_v17 = vmax.f32 %v1565_v54, 0.0  ;;  %v736_v18 = vmax.f32 %v1567_v19, 0.0 }
 0x149   : > { %v737_v24 = vmax.f32 %v1569_v31, 0.0  ;;  %v738_v27 = vmax.f32 %v1571_v12, 0.0  ;;  %v739_v21 = vmax.f32 %v1573_v34, 0.0  ;;  %v740_v25 = vmax.f32 %v1575_v57, 0.0 }
 0x14a   : > { %v741_v20 = vmax.f32 %v1577_v61, 0.0  ;;  %v742_v22 = vmax.f32 %v1579_v38, 0.0  ;;  %v743_v40 = vmax.f32 %v1581_v35, 0.0  ;;  %v744_v52 = vmax.f32 %v1583_v39, 0.0 }
 0x14b   : > { %v745_v32 = vmax.f32 %v1585_v42, 0.0  ;;  %v746_v47 = vmax.f32 %v1587_v44, 0.0  ;;  %v747_v2 = vmax.f32 %v1589_v46, 0.0  ;;  %v748_v14 = vmax.f32 %v1591_v48, 0.0 }
 0x14c   : > { %v749_v60 = vmax.f32 %v1593_v49, 0.0  ;;  %v750_v9 = vmax.f32 %v1595_v50, 0.0  ;;  %v751_v36 = vmax.f32 %v1597_v55, 0.0  ;;  %v752_v51 = vmax.f32 %v1599_v56, 0.0 }
 0x14d   : > { %v753_v28 = vmax.f32 %v1601_v58, 0.0  ;;  %v754_v45 = vmax.f32 %v1603_v59, 0.0  ;;  %v755_v26 = vmax.f32 %v1605_v62, 0.0  ;;  %v756_v41 = vmax.f32 %v1607_v63, 0.0 }
 0x14e   : > { %v757_v23 = vmax.f32 %v1609_v0, 0.0  ;;  %v758_v33 = vmax.f32 %v1611_v1, 0.0  ;;  %v759_v3 = vmax.f32 %v1613_v4, 0.0  ;;  %v760_v29 = vmax.f32 %v1615_v6, 0.0 }
 0x14f   : > { %v761_v37 = vmax.f32 %v1617_v7, 0.0  ;;  %v762_v53 = vmax.f32 %v1619_v8, 0.0  ;;  %v763_v15 = vmax.f32 %v1621_v10, 0.0  ;;  %v764_v5 = vmax.f32 %v1623_v11, 0.0 }
 0x150   : > { %v1061_v43 = vpack.c.bf16 %v733_v13, %v733_v13  ;;  %v1062_v30 = vpack.c.bf16 %v734_v16, %v734_v16  ;;  %v1063_v54 = vpack.c.bf16 %v735_v17, %v735_v17  ;;  %v1064_v19 = vpack.c.bf16 %v736_v18, %v736_v18 }
 0x151   : > { %v1065_v31 = vpack.c.bf16 %v737_v24, %v737_v24  ;;  %v1066_v12 = vpack.c.bf16 %v738_v27, %v738_v27  ;;  %v1067_v34 = vpack.c.bf16 %v739_v21, %v739_v21  ;;  %v1068_v57 = vpack.c.bf16 %v740_v25, %v740_v25 }
 0x152   : > { %v1069_v61 = vpack.c.bf16 %v741_v20, %v741_v20  ;;  %v1070_v38 = vpack.c.bf16 %v742_v22, %v742_v22  ;;  %v1071_v35 = vpack.c.bf16 %v743_v40, %v743_v40  ;;  %v1072_v39 = vpack.c.bf16 %v744_v52, %v744_v52  ;;  %894 = vst.msk [vmem:[%s1658_s23] sm:$0xf] %vm893_vm3, %v1061_v43 }
 0x153   : > { %895 = vst.msk [vmem:[%s1658_s23 + $0x4] sm:$0xf] %vm893_vm3, %v1062_v30  ;;  %896 = vst.msk [vmem:[%s1658_s23 + $0x8] sm:$0xf] %vm893_vm3, %v1063_v54  ;;  %v1073_v42 = vpack.c.bf16 %v745_v32, %v745_v32  ;;  %v1074_v44 = vpack.c.bf16 %v746_v47, %v746_v47  ;;  %v1075_v46 = vpack.c.bf16 %v747_v2, %v747_v2 }
 0x154   : > { %897 = vst.msk [vmem:[%s1658_s23 + $0xc] sm:$0xf] %vm893_vm3, %v1064_v19  ;;  %v1076_v48 = vpack.c.bf16 %v748_v14, %v748_v14  ;;  %898 = vst.msk [vmem:[%s1658_s23 + $0x10] sm:$0xf] %vm893_vm3, %v1065_v31  ;;  %v1077_v49 = vpack.c.bf16 %v749_v60, %v749_v60  ;;  %v1078_v50 = vpack.c.bf16 %v750_v9, %v750_v9 }
 0x155   : > { %899 = vst.msk [vmem:[%s1658_s23 + $0x14] sm:$0xf] %vm893_vm3, %v1066_v12  ;;  %900 = vst.msk [vmem:[%s1658_s23 + $0x18] sm:$0xf] %vm893_vm3, %v1067_v34  ;;  %v1079_v55 = vpack.c.bf16 %v751_v36, %v751_v36  ;;  %v1080_v56 = vpack.c.bf16 %v752_v51, %v752_v51  ;;  %v1081_v58 = vpack.c.bf16 %v753_v28, %v753_v28 }
 0x156   : > { %901 = vst.msk [vmem:[%s1658_s23 + $0x1c] sm:$0xf] %vm893_vm3, %v1068_v57  ;;  %902 = vst.msk [vmem:[%s1658_s23 + $0x20] sm:$0xf] %vm893_vm3, %v1069_v61  ;;  %v1082_v59 = vpack.c.bf16 %v754_v45, %v754_v45  ;;  %v1083_v62 = vpack.c.bf16 %v755_v26, %v755_v26  ;;  %v1084_v63 = vpack.c.bf16 %v756_v41, %v756_v41 }
 0x157   : > { %903 = vst.msk [vmem:[%s1658_s23 + $0x24] sm:$0xf] %vm893_vm3, %v1070_v38  ;;  %904 = vst.msk [vmem:[%s1658_s23 + $0x28] sm:$0xf] %vm893_vm3, %v1071_v35  ;;  %v1085_v0 = vpack.c.bf16 %v757_v23, %v757_v23  ;;  %v1086_v1 = vpack.c.bf16 %v758_v33, %v758_v33  ;;  %v1087_v4 = vpack.c.bf16 %v759_v3, %v759_v3 }
 0x158   : > { %905 = vst.msk [vmem:[%s1658_s23 + $0x2c] sm:$0xf] %vm893_vm3, %v1072_v39  ;;  %906 = vst.msk [vmem:[%s1658_s23 + $0x30] sm:$0xf] %vm893_vm3, %v1073_v42  ;;  %v1088_v6 = vpack.c.bf16 %v760_v29, %v760_v29  ;;  %v1089_v7 = vpack.c.bf16 %v761_v37, %v761_v37  ;;  %v1090_v8 = vpack.c.bf16 %v762_v53, %v762_v53 }
 0x159   : > { %907 = vst.msk [vmem:[%s1658_s23 + $0x34] sm:$0xf] %vm893_vm3, %v1074_v44  ;;  %908 = vst.msk [vmem:[%s1658_s23 + $0x38] sm:$0xf] %vm893_vm3, %v1075_v46  ;;  %v1091_v10 = vpack.c.bf16 %v763_v15, %v763_v15  ;;  %v1092_v11 = vpack.c.bf16 %v764_v5, %v764_v5 }
 0x15a   : > { %909 = vst.msk [vmem:[%s1658_s23 + $0x3c] sm:$0xf] %vm893_vm3, %v1076_v48  ;;  %910 = vst.msk [vmem:[%s1658_s23 + $0x40] sm:$0xf] %vm893_vm3, %v1077_v49 }
 0x15b   : > { %911 = vst.msk [vmem:[%s1658_s23 + $0x44] sm:$0xf] %vm893_vm3, %v1078_v50  ;;  %912 = vst.msk [vmem:[%s1658_s23 + $0x48] sm:$0xf] %vm893_vm3, %v1079_v55 }
 0x15c   : > { %913 = vst.msk [vmem:[%s1658_s23 + $0x4c] sm:$0xf] %vm893_vm3, %v1080_v56  ;;  %914 = vst.msk [vmem:[%s1658_s23 + $0x50] sm:$0xf] %vm893_vm3, %v1081_v58 }
 0x15d   : > { %915 = vst.msk [vmem:[%s1658_s23 + $0x54] sm:$0xf] %vm893_vm3, %v1082_v59  ;;  %916 = vst.msk [vmem:[%s1658_s23 + $0x58] sm:$0xf] %vm893_vm3, %v1083_v62 }
 0x15e   : > { %917 = vst.msk [vmem:[%s1658_s23 + $0x5c] sm:$0xf] %vm893_vm3, %v1084_v63  ;;  %918 = vst.msk [vmem:[%s1658_s23 + $0x60] sm:$0xf] %vm893_vm3, %v1085_v0 }
 0x15f   : > { %919 = vst.msk [vmem:[%s1658_s23 + $0x64] sm:$0xf] %vm893_vm3, %v1086_v1  ;;  %920 = vst.msk [vmem:[%s1658_s23 + $0x68] sm:$0xf] %vm893_vm3, %v1087_v4 }
 0x160   : > { %921 = vst.msk [vmem:[%s1658_s23 + $0x6c] sm:$0xf] %vm893_vm3, %v1088_v6  ;;  %922 = vst.msk [vmem:[%s1658_s23 + $0x70] sm:$0xf] %vm893_vm3, %v1089_v7 }
 0x161   : > { %923 = vst.msk [vmem:[%s1658_s23 + $0x74] sm:$0xf] %vm893_vm3, %v1090_v8  ;;  %924 = vst.msk [vmem:[%s1658_s23 + $0x78] sm:$0xf] %vm893_vm3, %v1091_v10 }
 0x162   : > { %925 = vst.msk [vmem:[%s1658_s23 + $0x7c] sm:$0xf] %vm893_vm3, %v1092_v11 }
 0x163 PF: > { %s12_s9 = sadd.s32 1, %s1193_s9  }
 0x164   : > { %p9_p4 = scmp.ge.s32.totalorder %s12_s9, 4  }
 0x166   :  { %11 = sbr.rel (!%p9_p4) target bundleno = 1 (0x1), region = 58 }

// kernel: encoder_forward.4
= control target key start
LH: loop header
LB: loop body
LE: loop exit
PB: predicated region body
PF: predicated region fallthrough
CT: control target
= control target key end

     0   :  { %vm654_vm0 = vcmask 523264   ;;  %vm880_vm1 = vcmask 519168   ;;  %s1620_s1 = inlined_call_operand.vmem [shape: bf16[512,64], index: 1, kind: input, shape index: {}]   ;;  %s1621_s0 = inlined_call_operand.vmem [shape: bf16[2,64,512], index: 0, kind: input, shape index: {}]   ;;  %s1622_s2 = inlined_call_operand.vmem [shape: bf16[2,64,64], index: 2, kind: output, shape index: {}]  }
   0x1   :  { %v1125_v0 = vld [vmem:[%s1620_s1 + $0x78] sm:$0xff]   ;;  %v1129_v4 = vld [vmem:[%s1620_s1 + $0x70] sm:$0xff]   ;;  %v1133_v8 = vld [vmem:[%s1620_s1 + $0x68] sm:$0xff]  }
   0x2   :  { %v1126_v1 = vld [vmem:[%s1620_s1 + $0xf8] sm:$0xff]   ;;  %997 = vmatprep.subr.bf16.mxu0 %v1125_v0  ;;  %v1130_v5 = vld [vmem:[%s1620_s1 + $0xf0] sm:$0xff]   ;;  %v1134_v9 = vld [vmem:[%s1620_s1 + $0xe8] sm:$0xff]  }
   0x3   :  { %v1127_v2 = vld [vmem:[%s1620_s1 + $0x38] sm:$0xff]   ;;  %1061 = vmatprep.subr.bf16.mxu1 %v1126_v1  ;;  %v1131_v6 = vld [vmem:[%s1620_s1 + $0x30] sm:$0xff]   ;;  %v1135_v10 = vld [vmem:[%s1620_s1 + $0x28] sm:$0xff]  }
   0x4   :  { %v1128_v3 = vld [vmem:[%s1620_s1 + $0xb8] sm:$0xff]   ;;  %998 = vmatpush3.bf16.msra.mxu0 %v1127_v2  ;;  %v1132_v7 = vld [vmem:[%s1620_s1 + $0xb0] sm:$0xff]   ;;  %v1136_v11 = vld [vmem:[%s1620_s1 + $0xa8] sm:$0xff]  }
   0x5   :  { %1062 = vmatpush3.bf16.msra.mxu1 %v1128_v3  ;;  %999 = vmatprep.subr.bf16.mxu0 %v1129_v4  ;;  %v1137_v12 = vld [vmem:[%s1620_s1 + $0x60] sm:$0xff]   ;;  %v1141_v16 = vld [vmem:[%s1620_s1 + $0x58] sm:$0xff]   ;;  %v1145_v20 = vld [vmem:[%s1620_s1 + $0x50] sm:$0xff]  }
   0x6   :  { %1063 = vmatprep.subr.bf16.mxu1 %v1130_v5  ;;  %v1138_v13 = vld [vmem:[%s1620_s1 + $0xe0] sm:$0xff]   ;;  %v1142_v17 = vld [vmem:[%s1620_s1 + $0xd8] sm:$0xff]   ;;  %v1146_v21 = vld [vmem:[%s1620_s1 + $0xd0] sm:$0xff]  }
   0x7   :  { %v1139_v14 = vld [vmem:[%s1620_s1 + $0x20] sm:$0xff]   ;;  %v1143_v18 = vld [vmem:[%s1620_s1 + $0x18] sm:$0xff]   ;;  %v1147_v22 = vld [vmem:[%s1620_s1 + $0x10] sm:$0xff]  }
   0x8   :  { %1000 = vmatpush3.bf16.msra.mxu0 %v1131_v6  ;;  %v1140_v15 = vld [vmem:[%s1620_s1 + $0xa0] sm:$0xff]   ;;  %v1144_v19 = vld [vmem:[%s1620_s1 + $0x98] sm:$0xff]   ;;  %v1148_v23 = vld [vmem:[%s1620_s1 + $0x90] sm:$0xff]  }
   0x9   :  { %1064 = vmatpush3.bf16.msra.mxu1 %v1132_v7  ;;  %1001 = vmatprep.subr.bf16.mxu0 %v1133_v8  ;;  %v1149_v24 = vld [vmem:[%s1620_s1 + $0x48] sm:$0xff]   ;;  %v1153_v28 = vld [vmem:[%s1620_s1 + $0x40] sm:$0xff]  }
   0xa   :  { %1065 = vmatprep.subr.bf16.mxu1 %v1134_v9  ;;  %v1150_v25 = vld [vmem:[%s1620_s1 + $0xc8] sm:$0xff]   ;;  %v1154_v29 = vld [vmem:[%s1620_s1 + $0xc0] sm:$0xff]  }
   0xb   :  { %v1151_v26 = vld [vmem:[%s1620_s1 + $0x8] sm:$0xff]   ;;  %v1155_v30 = vld [vmem:[%s1620_s1] sm:$0xff]  }
   0xc   :  { %1002 = vmatpush3.bf16.msra.mxu0 %v1135_v10  ;;  %v1152_v27 = vld [vmem:[%s1620_s1 + $0x88] sm:$0xff]   ;;  %v1156_v31 = vld [vmem:[%s1620_s1 + $0x80] sm:$0xff]  }
   0xd   :  { %1066 = vmatpush3.bf16.msra.mxu1 %v1136_v11  ;;  %1003 = vmatprep.subr.bf16.mxu0 %v1137_v12  ;;  %v1157_v32 = vld [vmem:[%s1621_s0] ss:$16 sps:$4 sm:$0xff]   ;;  %v1159_v33 = vld [vmem:[%s1621_s0 + $0x4] ss:$16 sps:$4 sm:$0xff]   ;;  %v1160_v34 = vld [vmem:[%s1621_s0 + $0x8] ss:$16 sps:$4 sm:$0xff]  }
   0xe   :  { %1067 = vmatprep.subr.bf16.mxu1 %v1138_v13  ;;  %v1162_v35 = vld [vmem:[%s1621_s0 + $0xc] ss:$16 sps:$4 sm:$0xff]   ;;  %492 = vmatprep.mubr.bf16.mxu0 %v1159_v33  ;;  %v1163_v36 = vld [vmem:[%s1621_s0 + $0x24] ss:$16 sps:$4 sm:$0xff]   ;;  %v1167_v38 = vld [vmem:[%s1621_s0 + $0x20] ss:$16 sps:$4 sm:$0xff]  }
   0xf   :  { %589 = vmatprep.mubr.bf16.mxu1 %v1162_v35  ;;  %v1165_v37 = vld [vmem:[%s1621_s0 + $0x2c] ss:$16 sps:$4 sm:$0xff]   ;;  %v1168_v39 = vld [vmem:[%s1621_s0 + $0x28] ss:$16 sps:$4 sm:$0xff]   ;;  %v1169_v40 = vld [vmem:[%s1621_s0 + $0x44] ss:$16 sps:$4 sm:$0xff]  }
  0x10   :  { %1004 = vmatpush3.bf16.msra.mxu0 %v1139_v14  ;;  %v1171_v41 = vld [vmem:[%s1621_s0 + $0x4c] ss:$16 sps:$4 sm:$0xff]   ;;  %v1173_v42 = vld [vmem:[%s1621_s0 + $0x40] ss:$16 sps:$4 sm:$0xff]   ;;  %v1174_v43 = vld [vmem:[%s1621_s0 + $0x48] ss:$16 sps:$4 sm:$0xff]  }
  0x11   :  { %1068 = vmatpush3.bf16.msra.mxu1 %v1140_v15  ;;  %1005 = vmatprep.subr.bf16.mxu0 %v1141_v16  ;;  %v1175_v44 = vld [vmem:[%s1621_s0 + $0x64] ss:$16 sps:$4 sm:$0xff]   ;;  %v1177_v45 = vld [vmem:[%s1621_s0 + $0x6c] ss:$16 sps:$4 sm:$0xff]   ;;  %v1179_v46 = vld [vmem:[%s1621_s0 + $0x60] ss:$16 sps:$4 sm:$0xff]  }
  0x12   :  { %1069 = vmatprep.subr.bf16.mxu1 %v1142_v17  ;;  %v1180_v47 = vld [vmem:[%s1621_s0 + $0x68] ss:$16 sps:$4 sm:$0xff]   ;;  %v1181_v48 = vld [vmem:[%s1621_s0 + $0x84] ss:$16 sps:$4 sm:$0xff]   ;;  %v1183_v49 = vld [vmem:[%s1621_s0 + $0x8c] ss:$16 sps:$4 sm:$0xff]  }
  0x13   :  { %v1185_v50 = vld [vmem:[%s1621_s0 + $0x80] ss:$16 sps:$4 sm:$0xff]   ;;  %v1186_v51 = vld [vmem:[%s1621_s0 + $0x88] ss:$16 sps:$4 sm:$0xff]   ;;  %v1187_v52 = vld [vmem:[%s1621_s0 + $0xa4] ss:$16 sps:$4 sm:$0xff]  }
  0x14   :  { %1006 = vmatpush3.bf16.msra.mxu0 %v1143_v18  ;;  %v1189_v53 = vld [vmem:[%s1621_s0 + $0xac] ss:$16 sps:$4 sm:$0xff]   ;;  %v1191_v54 = vld [vmem:[%s1621_s0 + $0xa0] ss:$16 sps:$4 sm:$0xff]   ;;  %v1192_v55 = vld [vmem:[%s1621_s0 + $0xa8] ss:$16 sps:$4 sm:$0xff]  }
  0x15   :  { %1070 = vmatpush3.bf16.msra.mxu1 %v1144_v19  ;;  %1007 = vmatprep.subr.bf16.mxu0 %v1145_v20  ;;  %v1193_v56 = vld [vmem:[%s1621_s0 + $0xc4] ss:$16 sps:$4 sm:$0xff]   ;;  %v1195_v57 = vld [vmem:[%s1621_s0 + $0xcc] ss:$16 sps:$4 sm:$0xff]   ;;  %v1197_v58 = vld [vmem:[%s1621_s0 + $0xc0] ss:$16 sps:$4 sm:$0xff]  }
  0x16   :  { %1071 = vmatprep.subr.bf16.mxu1 %v1146_v21  ;;  %v1198_v59 = vld [vmem:[%s1621_s0 + $0xc8] ss:$16 sps:$4 sm:$0xff]   ;;  %v1199_v60 = vld [vmem:[%s1621_s0 + $0xe4] ss:$16 sps:$4 sm:$0xff]   ;;  %v1201_v61 = vld [vmem:[%s1621_s0 + $0xec] ss:$16 sps:$4 sm:$0xff]  }
  0x17   :  { %v1203_v62 = vld [vmem:[%s1621_s0 + $0xe0] ss:$16 sps:$4 sm:$0xff]   ;;  %v1204_v63 = vld [vmem:[%s1621_s0 + $0xe8] ss:$16 sps:$4 sm:$0xff]  }
  0x18   :  { %1008 = vmatpush3.bf16.msra.mxu0 %v1147_v22 }
  0x19   :  { %1072 = vmatpush3.bf16.msra.mxu1 %v1148_v23  ;;  %1009 = vmatprep.subr.bf16.mxu0 %v1149_v24 }
  0x1a   :  { %1073 = vmatprep.subr.bf16.mxu1 %v1150_v25 }
  0x1c   :  { %1010 = vmatpush3.bf16.msra.mxu0 %v1151_v26 }
  0x1d   :  { %1074 = vmatpush3.bf16.msra.mxu1 %v1152_v27  ;;  %1011 = vmatprep.subr.bf16.mxu0 %v1153_v28 }
  0x1e   :  { %1075 = vmatprep.subr.bf16.mxu1 %v1154_v29 }
  0x20   :  { %1012 = vmatpush3.bf16.msra.mxu0 %v1155_v30 }
  0x21   :  { %1076 = vmatpush3.bf16.msra.mxu1 %v1156_v31 }
  0x23   :  { %493 = vmatmul.mubr.bf16.vlgmr.msra.gmra.mxu0 %v1157_v32 }
  0x24   :  { %590 = vmatmul.mubr.bf16.vlgmr.msra.gmra.mxu1 %v1160_v34  ;;  %500 = vmatprep.mubr.bf16.mxu0 %v1163_v36 }
  0x25   :  { %597 = vmatprep.mubr.bf16.mxu1 %v1165_v37 }
  0x2b   :  { %501 = vmatmul.mubr.bf16.gmra.mxu0 %v1167_v38 }
  0x2c   :  { %598 = vmatmul.mubr.bf16.gmra.mxu1 %v1168_v39  ;;  %508 = vmatprep.mubr.bf16.mxu0 %v1169_v40 }
  0x2d   :  { %605 = vmatprep.mubr.bf16.mxu1 %v1171_v41 }
  0x33   :  { %509 = vmatmul.mubr.bf16.gmra.mxu0 %v1173_v42 }
  0x34   :  { %606 = vmatmul.mubr.bf16.gmra.mxu1 %v1174_v43  ;;  %516 = vmatprep.mubr.bf16.mxu0 %v1175_v44 }
  0x35   :  { %613 = vmatprep.mubr.bf16.mxu1 %v1177_v45 }
  0x3b   :  { %517 = vmatmul.mubr.bf16.gmra.mxu0 %v1179_v46 }
  0x3c   :  { %614 = vmatmul.mubr.bf16.gmra.mxu1 %v1180_v47  ;;  %524 = vmatprep.mubr.bf16.mxu0 %v1181_v48 }
  0x3d   :  { %621 = vmatprep.mubr.bf16.mxu1 %v1183_v49 }
  0x43   :  { %525 = vmatmul.mubr.bf16.gmra.mxu0 %v1185_v50 }
  0x44   :  { %622 = vmatmul.mubr.bf16.gmra.mxu1 %v1186_v51  ;;  %532 = vmatprep.mubr.bf16.mxu0 %v1187_v52 }
  0x45   :  { %629 = vmatprep.mubr.bf16.mxu1 %v1189_v53 }
  0x4b   :  { %533 = vmatmul.mubr.bf16.gmra.mxu0 %v1191_v54 }
  0x4c   :  { %630 = vmatmul.mubr.bf16.gmra.mxu1 %v1192_v55  ;;  %540 = vmatprep.mubr.bf16.mxu0 %v1193_v56 }
  0x4d   :  { %637 = vmatprep.mubr.bf16.mxu1 %v1195_v57 }
  0x53   :  { %541 = vmatmul.mubr.bf16.gmra.mxu0 %v1197_v58 }
  0x54   :  { %638 = vmatmul.mubr.bf16.gmra.mxu1 %v1198_v59  ;;  %548 = vmatprep.mubr.bf16.mxu0 %v1199_v60 }
  0x55   :  { %645 = vmatprep.mubr.bf16.mxu1 %v1201_v61 }
  0x5b   :  { %549 = vmatmul.mubr.bf16.gmra.mxu0 %v1203_v62 }
  0x5c   :  { %646 = vmatmul.mubr.bf16.gmra.mxu1 %v1204_v63 }
  0xe3   :  { %v1013_v0 = vpop.f32.mrf.mxu0 }
  0xe4   :  { %v1077_v1 = vpop.f32.mrf.mxu1 }
  0xe5   :  { %v1014_v2 = vpop.f32.mrf.mxu0 }
  0xe6   :  { %v1078_v3 = vpop.f32.mrf.mxu1  ;;  %v1015_v15 = vadd.f32 %v1014_v2, %v1013_v0 }
  0xe7   :  { %v1016_v4 = vpop.f32.mrf.mxu0  ;;  %v1079_v16 = vadd.f32 %v1078_v3, %v1077_v1 }
  0xe8   :  { %v1080_v5 = vpop.f32.mrf.mxu1 }
  0xe9   :  { %v1017_v6 = vpop.f32.mrf.mxu0  ;;  %v1418_v26 = vadd.f32 %v1079_v16, %v1015_v15 }
  0xea   :  { %v1081_v7 = vpop.f32.mrf.mxu1  ;;  %v1018_v12 = vadd.f32 %v1017_v6, %v1016_v4 }
  0xeb   :  { %v1019_v8 = vpop.f32.mrf.mxu0  ;;  %v1082_v13 = vadd.f32 %v1081_v7, %v1080_v5  ;;  %v700_v36 = vmul.f32 %v1418_v26, %v1418_v26  ;;  %v655_v42 = vsel %vm654_vm0, %v1418_v26, 0.0 }
  0xec   :  { %v1083_v9 = vpop.f32.mrf.mxu1 }
  0xed   :  { %v1020_v10 = vpop.f32.mrf.mxu0  ;;  %v1416_v22 = vadd.f32 %v1082_v13, %v1018_v12  ;;  %v716_v50 = vsel %vm654_vm0, %v700_v36, 0.0 }
  0xee   :  { %v1084_v11 = vpop.f32.mrf.mxu1  ;;  %v1021_v18 = vadd.f32 %v1020_v10, %v1019_v8 }
  0xef   :  { %v1022_v14 = vpop.f32.mrf.mxu0  ;;  %v1085_v19 = vadd.f32 %v1084_v11, %v1083_v9  ;;  %v701_v32 = vmul.f32 %v1416_v22, %v1416_v22  ;;  %v656_v38 = vsel %vm654_vm0, %v1416_v22, 0.0 }
  0xf0   :  { %v1086_v17 = vpop.f32.mrf.mxu1  ;;  %v657_v51 = vadd.f32 %v656_v38, %v655_v42 }
  0xf1   :  { %v1023_v20 = vpop.f32.mrf.mxu0  ;;  %v1420_v28 = vadd.f32 %v1085_v19, %v1021_v18  ;;  %v717_v45 = vsel %vm654_vm0, %v701_v32, 0.0 }
  0xf2   :  { %v1087_v21 = vpop.f32.mrf.mxu1  ;;  %v1024_v23 = vadd.f32 %v1023_v20, %v1022_v14  ;;  %v718_v58 = vadd.f32 %v717_v45, %v716_v50 }
  0xf3   :  { %v1088_v24 = vadd.f32 %v1087_v21, %v1086_v17  ;;  %v1025_v25 = vpop.f32.mrf.mxu0  ;;  %v702_v39 = vmul.f32 %v1420_v28, %v1420_v28  ;;  %v658_v46 = vsel %vm654_vm0, %v1420_v28, 0.0 }
  0xf4   :  { %v1089_v27 = vpop.f32.mrf.mxu1  ;;  %v659_v59 = vadd.f32 %v658_v46, %v657_v51 }
  0xf5   :  { %v1026_v29 = vpop.f32.mrf.mxu0  ;;  %v1424_v33 = vadd.f32 %v1088_v24, %v1024_v23  ;;  %v719_v53 = vsel %vm654_vm0, %v702_v39, 0.0 }
  0xf6   :  { %v1027_v30 = vadd.f32 %v1026_v29, %v1025_v25  ;;  %v1090_v31 = vpop.f32.mrf.mxu1  ;;  %v720_v3 = vadd.f32 %v719_v53, %v718_v58 }
  0xf7   :  { %v1091_v34 = vadd.f32 %v1090_v31, %v1089_v27  ;;  %v1028_v35 = vpop.f32.mrf.mxu0  ;;  %v703_v47 = vmul.f32 %v1424_v33, %v1424_v33  ;;  %v660_v54 = vsel %vm654_vm0, %v1424_v33, 0.0 }
  0xf8   :  { %v1092_v37 = vpop.f32.mrf.mxu1  ;;  %v661_v4 = vadd.f32 %v660_v54, %v659_v59 }
  0xf9   :  { %v1432_v40 = vadd.f32 %v1091_v34, %v1027_v30  ;;  %v1029_v41 = vpop.f32.mrf.mxu0  ;;  %v721_v62 = vsel %vm654_vm0, %v703_v47, 0.0 }
  0xfa   :  { %v1030_v43 = vadd.f32 %v1029_v41, %v1028_v35  ;;  %v1093_v44 = vpop.f32.mrf.mxu1  ;;  %v722_v10 = vadd.f32 %v721_v62, %v720_v3 }
  0xfb   :  { %v1094_v48 = vadd.f32 %v1093_v44, %v1092_v37  ;;  %v1031_v49 = vpop.f32.mrf.mxu0  ;;  %v704_v55 = vmul.f32 %v1432_v40, %v1432_v40  ;;  %v662_v63 = vsel %vm654_vm0, %v1432_v40, 0.0 }
  0xfc   :  { %v1095_v52 = vpop.f32.mrf.mxu1  ;;  %v663_v11 = vadd.f32 %v662_v63, %v661_v4 }
  0xfd   :  { %v1447_v56 = vadd.f32 %v1094_v48, %v1030_v43  ;;  %v1032_v57 = vpop.f32.mrf.mxu0  ;;  %v723_v6 = vsel %vm654_vm0, %v704_v55, 0.0 }
  0xfe   :  { %v1033_v60 = vadd.f32 %v1032_v57, %v1031_v49  ;;  %v1096_v61 = vpop.f32.mrf.mxu1  ;;  %v724_v19 = vadd.f32 %v723_v6, %v722_v10 }
  0xff   :  { %v705_v0 = vmul.f32 %v1447_v56, %v1447_v56  ;;  %v1097_v1 = vadd.f32 %v1096_v61, %v1095_v52  ;;  %v1034_v2 = vpop.f32.mrf.mxu0  ;;  %v664_v7 = vsel %vm654_vm0, %v1447_v56, 0.0 }
 0x100   :  { %v1098_v5 = vpop.f32.mrf.mxu1  ;;  %v665_v20 = vadd.f32 %v664_v7, %v663_v11 }
 0x101   :  { %v1457_v8 = vadd.f32 %v1097_v1, %v1033_v60  ;;  %v1035_v9 = vpop.f32.mrf.mxu0  ;;  %v725_v14 = vsel %vm654_vm0, %v705_v0, 0.0 }
 0x102   :  { %v1036_v12 = vadd.f32 %v1035_v9, %v1034_v2  ;;  %v1099_v13 = vpop.f32.mrf.mxu1  ;;  %v726_v27 = vadd.f32 %v725_v14, %v724_v19 }
 0x103   :  { %v666_v15 = vsel %vm654_vm0, %v1457_v8, 0.0  ;;  %v706_v16 = vmul.f32 %v1457_v8, %v1457_v8  ;;  %v1100_v17 = vadd.f32 %v1099_v13, %v1098_v5  ;;  %v1037_v18 = vpop.f32.mrf.mxu0 }
 0x104   :  { %v1101_v21 = vpop.f32.mrf.mxu1  ;;  %v667_v29 = vadd.f32 %v666_v15, %v665_v20 }
 0x105   :  { %v727_v23 = vsel %vm654_vm0, %v706_v16, 0.0  ;;  %v1465_v24 = vadd.f32 %v1100_v17, %v1036_v12  ;;  %v1038_v25 = vpop.f32.mrf.mxu0 }
 0x106   :  { %v1102_v30 = vpop.f32.mrf.mxu1  ;;  %v728_v35 = vadd.f32 %v727_v23, %v726_v27  ;;  %v1039_v59 = vadd.f32 %v1038_v25, %v1037_v18 }
 0x107   :  { %v668_v31 = vsel %vm654_vm0, %v1465_v24, 0.0  ;;  %v707_v32 = vmul.f32 %v1465_v24, %v1465_v24  ;;  %v1040_v34 = vpop.f32.mrf.mxu0  ;;  %v1103_v60 = vadd.f32 %v1102_v30, %v1101_v21 }
 0x108   :  { %v669_v36 = vadd.f32 %v668_v31, %v667_v29  ;;  %v1104_v37 = vpop.f32.mrf.mxu1 }
 0x109   :  { %v729_v38 = vsel %vm654_vm0, %v707_v32, 0.0  ;;  %v1041_v39 = vpop.f32.mrf.mxu0  ;;  %v1474_v11 = vadd.f32 %v1103_v60, %v1039_v59 }
 0x10a   :  { %v670_v41 = vrot.slane %v669_v36, 4  ;;  %v730_v42 = vadd.f32 %v729_v38, %v728_v35  ;;  %v1105_v43 = vpop.f32.mrf.mxu1  ;;  %v1042_v52 = vadd.f32 %v1041_v39, %v1040_v34 }
 0x10b   :  { %v1043_v44 = vpop.f32.mrf.mxu0  ;;  %v1106_v53 = vadd.f32 %v1105_v43, %v1104_v37  ;;  %v708_v30 = vmul.f32 %v1474_v11, %v1474_v11  ;;  %v676_v34 = vsel %vm654_vm0, %v1474_v11, 0.0 }
 0x10c   :  { %v671_v45 = vadd.f32 %v670_v41, %v669_v36  ;;  %v731_v46 = vrot.slane %v730_v42, 4  ;;  %v1107_v47 = vpop.f32.mrf.mxu1 }
 0x10d   :  { %v1044_v48 = vpop.f32.mrf.mxu0  ;;  %v1472_v3 = vadd.f32 %v1106_v53, %v1042_v52 }
 0x10e   :  { %v672_v49 = vrot.slane %v671_v45, 2  ;;  %v732_v50 = vadd.f32 %v731_v46, %v730_v42  ;;  %v1108_v51 = vpop.f32.mrf.mxu1  ;;  %v1045_v0 = vadd.f32 %v1044_v48, %v1043_v44  ;;  %v737_v48 = vsel %vm654_vm0, %v708_v30, 0.0 }
 0x10f   :  { %v1046_v54 = vpop.f32.mrf.mxu0  ;;  %v1109_v1 = vadd.f32 %v1108_v51, %v1107_v47  ;;  %v677_v17 = vsel %vm654_vm0, %v1472_v3, 0.0  ;;  %v709_v25 = vmul.f32 %v1472_v3, %v1472_v3 }
 0x110   :  { %v673_v55 = vadd.f32 %v672_v49, %v671_v45  ;;  %v733_v57 = vrot.slane %v732_v50, 2  ;;  %v1110_v58 = vpop.f32.mrf.mxu1  ;;  %v678_v38 = vadd.f32 %v677_v17, %v676_v34 }
 0x111   :  { %v1047_v61 = vpop.f32.mrf.mxu0  ;;  %v1478_v15 = vadd.f32 %v1109_v1, %v1045_v0  ;;  %v738_v45 = vsel %vm654_vm0, %v709_v25, 0.0 }
 0x112   :  { %v674_v62 = vrot.slane %v673_v55, 1  ;;  %v734_v63 = vadd.f32 %v733_v57, %v732_v50  ;;  %v1111_v2 = vpop.f32.mrf.mxu1  ;;  %v1048_v7 = vadd.f32 %v1047_v61, %v1046_v54 }
 0x113   :  { %v1049_v4 = vpop.f32.mrf.mxu0  ;;  %v1112_v9 = vadd.f32 %v1111_v2, %v1110_v58  ;;  %v679_v35 = vsel %vm654_vm0, %v1478_v15, 0.0  ;;  %v710_v36 = vmul.f32 %v1478_v15, %v1478_v15  ;;  %v739_v58 = vadd.f32 %v738_v45, %v737_v48 }
 0x114   :  { %v675_v5 = vadd.f32 %v674_v62, %v673_v55  ;;  %v735_v6 = vrot.slane %v734_v63, 1  ;;  %v1113_v10 = vpop.f32.mrf.mxu1  ;;  %v680_v49 = vadd.f32 %v679_v35, %v678_v38 }
 0x115   :  { %v1050_v12 = vpop.f32.mrf.mxu0  ;;  %v1486_v27 = vadd.f32 %v1112_v9, %v1048_v7  ;;  %v740_v53 = vsel %vm654_vm0, %v710_v36, 0.0 }
 0x116   :  { %v1476_v13 = vmul.f32 0.015625, %v675_v5  ;;  %v736_v14 = vadd.f32 %v735_v6, %v734_v63  ;;  %v1114_v16 = vpop.f32.mrf.mxu1  ;;  %v1051_v18 = vadd.f32 %v1050_v12, %v1049_v4  ;;  %v741_v2 = vadd.f32 %v740_v53, %v739_v58 }
 0x117   :  { %v1115_v19 = vadd.f32 %v1114_v16, %v1113_v10  ;;  %v1052_v20 = vpop.f32.mrf.mxu0  ;;  %v711_v46 = vmul.f32 %v1486_v27, %v1486_v27  ;;  %v681_v50 = vsel %vm654_vm0, %v1486_v27, 0.0 }
 0x118   :  { %v758_v21 = vmul.f32 0.015625, %v736_v14  ;;  %v760_v23 = vmul.f32 %v1476_v13, %v1476_v13  ;;  %v1116_v29 = vpop.f32.mrf.mxu1  ;;  %v682_v62 = vadd.f32 %v681_v50, %v680_v49  ;;  %v764_v35 = vsub.f32 %v1418_v26, %v1476_v13 }
 0x119   :  { %v1053_v31 = vpop.f32.mrf.mxu0  ;;  %v1496_v39 = vadd.f32 %v1115_v19, %v1051_v18  ;;  %v742_v63 = vsel %vm654_vm0, %v711_v46, 0.0  ;;  %v765_v36 = vsub.f32 %v1416_v22, %v1476_v13  ;;  %v770_v26 = vsub.f32 %v1457_v8, %v1476_v13 }
 0x11a   :  { %v762_v32 = vsub.f32 %v758_v21, %v760_v23  ;;  %v1117_v37 = vpop.f32.mrf.mxu1  ;;  %v1054_v41 = vadd.f32 %v1053_v31, %v1052_v20  ;;  %v743_v14 = vadd.f32 %v742_v63, %v741_v2  ;;  %v771_v22 = vsub.f32 %v1465_v24, %v1476_v13 }
 0x11b   :  { %v1118_v42 = vadd.f32 %v1117_v37, %v1116_v29  ;;  %v1055_v43 = vpop.f32.mrf.mxu0  ;;  %v712_v54 = vmul.f32 %v1496_v39, %v1496_v39  ;;  %v683_v59 = vsel %vm654_vm0, %v1496_v39, 0.0 }
 0x11c   :  { %v780_v44 = vadd.f32 1e-05, %v762_v32  ;;  %v1119_v47 = vpop.f32.mrf.mxu1  ;;  %v684_v7 = vadd.f32 %v683_v59, %v682_v62 }
 0x11d   :  { %v1504_v51 = vadd.f32 %v1118_v42, %v1054_v41  ;;  %v1056_v52 = vpop.f32.mrf.mxu0  ;;  %v744_v9 = vsel %vm654_vm0, %v712_v54, 0.0  ;;  %v766_v41 = vsub.f32 %v1420_v28, %v1476_v13  ;;  %v767_v42 = vsub.f32 %v1424_v33, %v1476_v13 }
 0x11e   :  { %1205 = vrsqrt.f32 %v780_v44  ;;  %v1057_v55 = vadd.f32 %v1056_v52, %v1055_v43  ;;  %v1120_v57 = vpop.f32.mrf.mxu1  ;;  %v745_v21 = vadd.f32 %v744_v9, %v743_v14  ;;  %v768_v43 = vsub.f32 %v1432_v40, %v1476_v13 }
 0x11f   :  { %v1121_v60 = vadd.f32 %v1120_v57, %v1119_v47  ;;  %v1058_v61 = vpop.f32.mrf.mxu0  ;;  %v713_v0 = vmul.f32 %v1504_v51, %v1504_v51  ;;  %v685_v4 = vsel %vm654_vm0, %v1504_v51, 0.0  ;;  %v769_v44 = vsub.f32 %v1447_v56, %v1476_v13 }
 0x120   :  { %v1122_v1 = vpop.f32.mrf.mxu1  ;;  %v686_v19 = vadd.f32 %v685_v4, %v684_v7 }
 0x121   :  { %v1516_v5 = vadd.f32 %v1121_v60, %v1057_v55  ;;  %v1059_v6 = vpop.f32.mrf.mxu0  ;;  %v746_v20 = vsel %vm654_vm0, %v713_v0, 0.0 }
 0x122   :  { %v1060_v10 = vadd.f32 %v1059_v6, %v1058_v61  ;;  %v1123_v12 = vpop.f32.mrf.mxu1  ;;  %v747_v30 = vadd.f32 %v746_v20, %v745_v21 }
 0x123   :  { %v687_v16 = vsel %vm654_vm0, %v1516_v5, 0.0  ;;  %v714_v17 = vmul.f32 %v1516_v5, %v1516_v5  ;;  %v1124_v18 = vadd.f32 %v1123_v12, %v1122_v1 }
 0x124   :  { %v688_v25 = vadd.f32 %v687_v16, %v686_v19 }
 0x125   :  { %v1524_v23 = vadd.f32 %v1124_v18, %v1060_v10  ;;  %v748_v29 = vsel %vm654_vm0, %v714_v17, 0.0 }
 0x126   :  { %v749_v37 = vadd.f32 %v748_v29, %v747_v30 }
 0x127   :  { %v689_v31 = vsel %vm654_vm0, %v1524_v23, 0.0  ;;  %v715_v32 = vmul.f32 %v1524_v23, %v1524_v23 }
 0x128   :  { %v690_v34 = vadd.f32 %v689_v31, %v688_v25 }
 0x129   :  { %v750_v38 = vsel %vm654_vm0, %v715_v32, 0.0 }
 0x12a   :  { %v691_v46 = vrot.slane %v690_v34, 4  ;;  %v751_v47 = vadd.f32 %v750_v38, %v749_v37 }
 0x12b   :  { %v1206_v45 = vpop.eup %1205 }
 0x12c   :  { %v784_v48 = vmul.f32 %v1206_v45, %v764_v35  ;;  %v785_v28 = vmul.f32 %v1206_v45, %v765_v36  ;;  %v786_v49 = vmul.f32 %v1206_v45, %v766_v41  ;;  %v787_v50 = vmul.f32 %v1206_v45, %v767_v42 }
 0x12d   :  { %v788_v33 = vmul.f32 %v1206_v45, %v768_v43  ;;  %v789_v52 = vmul.f32 %v1206_v45, %v769_v44  ;;  %v790_v53 = vmul.f32 %v1206_v45, %v770_v26  ;;  %v791_v40 = vmul.f32 %v1206_v45, %v771_v22 }
 0x12e   :  { %v800_v54 = vmax.f32 %v784_v48, 0.0  ;;  %v801_v55 = vmax.f32 %v785_v28, 0.0  ;;  %v802_v56 = vmax.f32 %v786_v49, 0.0  ;;  %v803_v57 = vmax.f32 %v787_v50, 0.0 }
 0x12f   :  { %v804_v58 = vmax.f32 %v788_v33, 0.0  ;;  %v805_v59 = vmax.f32 %v789_v52, 0.0  ;;  %v806_v8 = vmax.f32 %v790_v53, 0.0  ;;  %v807_v60 = vmax.f32 %v791_v40, 0.0 }
 0x130   :  { %v981_v61 = vpack.c.bf16 %v800_v54, %v800_v54  ;;  %v982_v24 = vpack.c.bf16 %v801_v55, %v801_v55  ;;  %v983_v13 = vpack.c.bf16 %v802_v56, %v802_v56  ;;  %v984_v62 = vpack.c.bf16 %v803_v57, %v803_v57 }
 0x131   :  { %v985_v63 = vpack.c.bf16 %v804_v58, %v804_v58  ;;  %v986_v0 = vpack.c.bf16 %v805_v59, %v805_v59  ;;  %v987_v1 = vpack.c.bf16 %v806_v8, %v806_v8  ;;  %v988_v2 = vpack.c.bf16 %v807_v60, %v807_v60 }
 0x132   :  { %881 = vst.msk [vmem:[%s1622_s2] sm:$0xf] %vm880_vm1, %v981_v61  ;;  %882 = vst.msk [vmem:[%s1622_s2 + $0x4] sm:$0xf] %vm880_vm1, %v982_v24  ;;  %v692_v4 = vadd.f32 %v691_v46, %v690_v34  ;;  %v752_v6 = vrot.slane %v751_v47, 4 }
 0x133   :  { %883 = vst.msk [vmem:[%s1622_s2 + $0x8] sm:$0xf] %vm880_vm1, %v983_v13  ;;  %884 = vst.msk [vmem:[%s1622_s2 + $0xc] sm:$0xf] %vm880_vm1, %v984_v62 }
 0x134   :  { %885 = vst.msk [vmem:[%s1622_s2 + $0x10] sm:$0xf] %vm880_vm1, %v985_v63  ;;  %886 = vst.msk [vmem:[%s1622_s2 + $0x14] sm:$0xf] %vm880_vm1, %v986_v0  ;;  %v693_v7 = vrot.slane %v692_v4, 2  ;;  %v753_v9 = vadd.f32 %v752_v6, %v751_v47 }
 0x135   :  { %887 = vst.msk [vmem:[%s1622_s2 + $0x18] sm:$0xf] %vm880_vm1, %v987_v1  ;;  %888 = vst.msk [vmem:[%s1622_s2 + $0x1c] sm:$0xf] %vm880_vm1, %v988_v2 }
 0x136   :  { %v694_v10 = vadd.f32 %v693_v7, %v692_v4  ;;  %v754_v12 = vrot.slane %v753_v9, 2 }
 0x138   :  { %v695_v14 = vrot.slane %v694_v10, 1  ;;  %v755_v16 = vadd.f32 %v754_v12, %v753_v9 }
 0x13a   :  { %v696_v17 = vadd.f32 %v695_v14, %v694_v10  ;;  %v756_v18 = vrot.slane %v755_v16, 1 }
 0x13c   :  { %v699_v19 = vmul.f32 0.015625, %v696_v17  ;;  %v757_v20 = vadd.f32 %v756_v18, %v755_v16 }
 0x13e   :  { %v759_v21 = vmul.f32 0.015625, %v757_v20  ;;  %v761_v25 = vmul.f32 %v699_v19, %v699_v19  ;;  %v772_v31 = vsub.f32 %v1474_v11, %v699_v19  ;;  %v773_v32 = vsub.f32 %v1472_v3, %v699_v19 }
 0x13f   :  { %v774_v34 = vsub.f32 %v1478_v15, %v699_v19  ;;  %v775_v35 = vsub.f32 %v1486_v27, %v699_v19  ;;  %v776_v37 = vsub.f32 %v1496_v39, %v699_v19  ;;  %v777_v38 = vsub.f32 %v1504_v51, %v699_v19 }
 0x140   :  { %v763_v29 = vsub.f32 %v759_v21, %v761_v25  ;;  %v778_v41 = vsub.f32 %v1516_v5, %v699_v19  ;;  %v779_v42 = vsub.f32 %v1524_v23, %v699_v19 }
 0x142   :  { %v781_v30 = vadd.f32 1e-05, %v763_v29 }
 0x144   :  { %1207 = vrsqrt.f32 %v781_v30 }
 0x151   :  { %v1208_v36 = vpop.eup %1207 }
 0x152   :  { %v792_v43 = vmul.f32 %v1208_v36, %v772_v31  ;;  %v793_v44 = vmul.f32 %v1208_v36, %v773_v32  ;;  %v794_v45 = vmul.f32 %v1208_v36, %v774_v34  ;;  %v795_v26 = vmul.f32 %v1208_v36, %v775_v35 }
 0x153   :  { %v796_v11 = vmul.f32 %v1208_v36, %v776_v37  ;;  %v797_v22 = vmul.f32 %v1208_v36, %v777_v38  ;;  %v798_v3 = vmul.f32 %v1208_v36, %v778_v41  ;;  %v799_v46 = vmul.f32 %v1208_v36, %v779_v42 }
 0x154   :  { %v808_v15 = vmax.f32 %v792_v43, 0.0  ;;  %v809_v47 = vmax.f32 %v793_v44, 0.0  ;;  %v810_v27 = vmax.f32 %v794_v45, 0.0  ;;  %v811_v48 = vmax.f32 %v795_v26, 0.0 }
 0x155   :  { %v812_v28 = vmax.f32 %v796_v11, 0.0  ;;  %v813_v39 = vmax.f32 %v797_v22, 0.0  ;;  %v814_v49 = vmax.f32 %v798_v3, 0.0  ;;  %v815_v51 = vmax.f32 %v799_v46, 0.0 }
 0x156   :  { %v989_v50 = vpack.c.bf16 %v808_v15, %v808_v15  ;;  %v990_v5 = vpack.c.bf16 %v809_v47, %v809_v47  ;;  %v991_v33 = vpack.c.bf16 %v810_v27, %v810_v27  ;;  %v992_v23 = vpack.c.bf16 %v811_v48, %v811_v48 }
 0x157   :  { %v993_v52 = vpack.c.bf16 %v812_v28, %v812_v28  ;;  %v994_v53 = vpack.c.bf16 %v813_v39, %v813_v39  ;;  %v995_v40 = vpack.c.bf16 %v814_v49, %v814_v49  ;;  %v996_v54 = vpack.c.bf16 %v815_v51, %v815_v51 }
 0x158   :  { %889 = vst.msk [vmem:[%s1622_s2 + $0x20] sm:$0xf] %vm880_vm1, %v989_v50  ;;  %890 = vst.msk [vmem:[%s1622_s2 + $0x24] sm:$0xf] %vm880_vm1, %v990_v5 }
 0x159   :  { %891 = vst.msk [vmem:[%s1622_s2 + $0x28] sm:$0xf] %vm880_vm1, %v991_v33  ;;  %892 = vst.msk [vmem:[%s1622_s2 + $0x2c] sm:$0xf] %vm880_vm1, %v992_v23 }
 0x15a   :  { %893 = vst.msk [vmem:[%s1622_s2 + $0x30] sm:$0xf] %vm880_vm1, %v993_v52  ;;  %894 = vst.msk [vmem:[%s1622_s2 + $0x34] sm:$0xf] %vm880_vm1, %v994_v53 }
 0x15b   :  { %895 = vst.msk [vmem:[%s1622_s2 + $0x38] sm:$0xf] %vm880_vm1, %v995_v40  ;;  %896 = vst.msk [vmem:[%s1622_s2 + $0x3c] sm:$0xf] %vm880_vm1, %v996_v54 }

// kernel: encoder_forward.5
= control target key start
LH: loop header
LB: loop body
LE: loop exit
PB: predicated region body
PF: predicated region fallthrough
CT: control target
= control target key end

     0   :  { %s1449_s1 = inlined_call_operand.vmem [shape: bf16[1024,128], index: 1, kind: input, shape index: {}]   ;;  %s1450_s0 = inlined_call_operand.vmem [shape: bf16[2,16,1024], index: 0, kind: input, shape index: {}]   ;;  %s1451_s2 = inlined_call_operand.vmem [shape: bf16[2,16,128], index: 2, kind: output, shape index: {}]  }
   0x1   :  { %v1108_v0 = vld [vmem:[%s1449_s1 + $0x78] sm:$0xff]   ;;  %v1112_v4 = vld [vmem:[%s1449_s1 + $0x70] sm:$0xff]   ;;  %v1116_v8 = vld [vmem:[%s1449_s1 + $0x68] sm:$0xff]  }
   0x2   :  { %v1109_v1 = vld [vmem:[%s1449_s1 + $0xf8] sm:$0xff]   ;;  %996 = vmatprep.subr.bf16.mxu0 %v1108_v0  ;;  %v1113_v5 = vld [vmem:[%s1449_s1 + $0xf0] sm:$0xff]   ;;  %v1117_v9 = vld [vmem:[%s1449_s1 + $0xe8] sm:$0xff]  }
   0x3   :  { %v1110_v2 = vld [vmem:[%s1449_s1 + $0x38] sm:$0xff]   ;;  %1024 = vmatprep.subr.bf16.mxu1 %v1109_v1  ;;  %v1114_v6 = vld [vmem:[%s1449_s1 + $0x30] sm:$0xff]   ;;  %v1118_v10 = vld [vmem:[%s1449_s1 + $0x28] sm:$0xff]  }
   0x4   :  { %v1111_v3 = vld [vmem:[%s1449_s1 + $0xb8] sm:$0xff]   ;;  %997 = vmatpush3.bf16.msra.mxu0 %v1110_v2  ;;  %v1115_v7 = vld [vmem:[%s1449_s1 + $0xb0] sm:$0xff]   ;;  %v1119_v11 = vld [vmem:[%s1449_s1 + $0xa8] sm:$0xff]  }
   0x5   :  { %1025 = vmatpush3.bf16.msra.mxu1 %v1111_v3  ;;  %998 = vmatprep.subr.bf16.mxu0 %v1112_v4  ;;  %v1120_v12 = vld [vmem:[%s1449_s1 + $0x60] sm:$0xff]   ;;  %v1124_v16 = vld [vmem:[%s1449_s1 + $0x58] sm:$0xff]   ;;  %v1128_v20 = vld [vmem:[%s1449_s1 + $0x50] sm:$0xff]  }
   0x6   :  { %1026 = vmatprep.subr.bf16.mxu1 %v1113_v5  ;;  %v1121_v13 = vld [vmem:[%s1449_s1 + $0xe0] sm:$0xff]   ;;  %v1125_v17 = vld [vmem:[%s1449_s1 + $0xd8] sm:$0xff]   ;;  %v1129_v21 = vld [vmem:[%s1449_s1 + $0xd0] sm:$0xff]  }
   0x7   :  { %v1122_v14 = vld [vmem:[%s1449_s1 + $0x20] sm:$0xff]   ;;  %v1126_v18 = vld [vmem:[%s1449_s1 + $0x18] sm:$0xff]   ;;  %v1130_v22 = vld [vmem:[%s1449_s1 + $0x10] sm:$0xff]  }
   0x8   :  { %999 = vmatpush3.bf16.msra.mxu0 %v1114_v6  ;;  %v1123_v15 = vld [vmem:[%s1449_s1 + $0xa0] sm:$0xff]   ;;  %v1127_v19 = vld [vmem:[%s1449_s1 + $0x98] sm:$0xff]   ;;  %v1131_v23 = vld [vmem:[%s1449_s1 + $0x90] sm:$0xff]  }
   0x9   :  { %1027 = vmatpush3.bf16.msra.mxu1 %v1115_v7  ;;  %1000 = vmatprep.subr.bf16.mxu0 %v1116_v8  ;;  %v1132_v24 = vld [vmem:[%s1449_s1 + $0x48] sm:$0xff]   ;;  %v1136_v28 = vld [vmem:[%s1449_s1 + $0x40] sm:$0xff]   ;;  %v1140_v40 = vld [vmem:[%s1449_s1 + $0x178] sm:$0xff]  }
   0xa   :  { %1028 = vmatprep.subr.bf16.mxu1 %v1117_v9  ;;  %v1133_v25 = vld [vmem:[%s1449_s1 + $0xc8] sm:$0xff]   ;;  %v1137_v29 = vld [vmem:[%s1449_s1 + $0xc0] sm:$0xff]   ;;  %v1141_v41 = vld [vmem:[%s1449_s1 + $0x1f8] sm:$0xff]  }
   0xb   :  { %v1134_v26 = vld [vmem:[%s1449_s1 + $0x8] sm:$0xff]   ;;  %v1138_v30 = vld [vmem:[%s1449_s1] sm:$0xff]   ;;  %v1142_v42 = vld [vmem:[%s1449_s1 + $0x138] sm:$0xff]  }
   0xc   :  { %1001 = vmatpush3.bf16.msra.mxu0 %v1118_v10  ;;  %v1135_v27 = vld [vmem:[%s1449_s1 + $0x88] sm:$0xff]   ;;  %v1139_v31 = vld [vmem:[%s1449_s1 + $0x80] sm:$0xff]   ;;  %v1143_v43 = vld [vmem:[%s1449_s1 + $0x1b8] sm:$0xff]  }
   0xd   :  { %1029 = vmatpush3.bf16.msra.mxu1 %v1119_v11  ;;  %1002 = vmatprep.subr.bf16.mxu0 %v1120_v12  ;;  %v12_v32 = vld [vmem:[%s1450_s0] sm:$0xff]  ;;  %v13_v34 = vld [vmem:[%s1450_s0 + $0x8] sm:$0xff]  ;;  %v1144_v44 = vld [vmem:[%s1449_s1 + $0x170] sm:$0xff]  }
   0xe   :  { %1030 = vmatprep.subr.bf16.mxu1 %v1121_v13  ;;  %v16_v33 = vld [vmem:[%s1450_s0 + $0x20] sm:$0xff]  ;;  %v17_v37 = vld [vmem:[%s1450_s0 + $0x28] sm:$0xff]  ;;  %v1145_v45 = vld [vmem:[%s1449_s1 + $0x1f0] sm:$0xff]  }
   0xf   :  { %v897_v35 = vcombine.low %v12_v32, %v16_v33  ;;  %v898_v36 = vcombine.high %v12_v32, %v16_v33  ;;  %v899_v38 = vcombine.low %v13_v34, %v17_v37  ;;  %v900_v39 = vcombine.high %v13_v34, %v17_v37  ;;  %v1146_v46 = vld [vmem:[%s1449_s1 + $0x130] sm:$0xff]   ;;  %v1148_v48 = vld [vmem:[%s1449_s1 + $0x168] sm:$0xff]   ;;  %v1152_v52 = vld [vmem:[%s1449_s1 + $0x160] sm:$0xff]  }
  0x10   :  { %1003 = vmatpush3.bf16.msra.mxu0 %v1122_v14  ;;  %v1147_v47 = vld [vmem:[%s1449_s1 + $0x1b0] sm:$0xff]   ;;  %v1149_v49 = vld [vmem:[%s1449_s1 + $0x1e8] sm:$0xff]   ;;  %v1153_v53 = vld [vmem:[%s1449_s1 + $0x1e0] sm:$0xff]  }
  0x11   :  { %1031 = vmatpush3.bf16.msra.mxu1 %v1123_v15  ;;  %1004 = vmatprep.subr.bf16.mxu0 %v1124_v16  ;;  %v1150_v50 = vld [vmem:[%s1449_s1 + $0x128] sm:$0xff]   ;;  %v1154_v54 = vld [vmem:[%s1449_s1 + $0x120] sm:$0xff]   ;;  %v1156_v56 = vld [vmem:[%s1449_s1 + $0x158] sm:$0xff]  }
  0x12   :  { %1032 = vmatprep.subr.bf16.mxu1 %v1125_v17  ;;  %652 = vmatprep.mubr.bf16.mxu0 %v898_v36  ;;  %v1151_v51 = vld [vmem:[%s1449_s1 + $0x1a8] sm:$0xff]   ;;  %v1155_v55 = vld [vmem:[%s1449_s1 + $0x1a0] sm:$0xff]   ;;  %v1157_v57 = vld [vmem:[%s1449_s1 + $0x1d8] sm:$0xff]  }
  0x13   :  { %701 = vmatprep.mubr.bf16.mxu1 %v900_v39  ;;  %v20_v58 = vld [vmem:[%s1450_s0 + $0x40] sm:$0xff]  ;;  %v21_v61 = vld [vmem:[%s1450_s0 + $0x48] sm:$0xff]  ;;  %v1158_v1 = vld [vmem:[%s1449_s1 + $0x118] sm:$0xff]  }
  0x14   :  { %1005 = vmatpush3.bf16.msra.mxu0 %v1126_v18  ;;  %v24_v59 = vld [vmem:[%s1450_s0 + $0x60] sm:$0xff]  ;;  %v25_v62 = vld [vmem:[%s1450_s0 + $0x68] sm:$0xff]  ;;  %v1159_v3 = vld [vmem:[%s1449_s1 + $0x198] sm:$0xff]  }
  0x15   :  { %1033 = vmatpush3.bf16.msra.mxu1 %v1127_v19  ;;  %1006 = vmatprep.subr.bf16.mxu0 %v1128_v20  ;;  %v906_v60 = vcombine.high %v20_v58, %v24_v59  ;;  %v905_v63 = vcombine.low %v20_v58, %v24_v59  ;;  %v908_v0 = vcombine.high %v21_v61, %v25_v62  ;;  %v1160_v4 = vld [vmem:[%s1449_s1 + $0x150] sm:$0xff]   ;;  %v1164_v8 = vld [vmem:[%s1449_s1 + $0x148] sm:$0xff]   ;;  %v1168_v12 = vld [vmem:[%s1449_s1 + $0x140] sm:$0xff]  }
  0x16   :  { %1034 = vmatprep.subr.bf16.mxu1 %v1129_v21  ;;  %v907_v2 = vcombine.low %v21_v61, %v25_v62  ;;  %v1161_v5 = vld [vmem:[%s1449_s1 + $0x1d0] sm:$0xff]   ;;  %v1165_v9 = vld [vmem:[%s1449_s1 + $0x1c8] sm:$0xff]   ;;  %v1169_v13 = vld [vmem:[%s1449_s1 + $0x1c0] sm:$0xff]  }
  0x17   :  { %v1162_v6 = vld [vmem:[%s1449_s1 + $0x110] sm:$0xff]   ;;  %v1166_v10 = vld [vmem:[%s1449_s1 + $0x108] sm:$0xff]   ;;  %v1170_v14 = vld [vmem:[%s1449_s1 + $0x100] sm:$0xff]  }
  0x18   :  { %1007 = vmatpush3.bf16.msra.mxu0 %v1130_v22  ;;  %v1163_v7 = vld [vmem:[%s1449_s1 + $0x190] sm:$0xff]   ;;  %v1167_v11 = vld [vmem:[%s1449_s1 + $0x188] sm:$0xff]   ;;  %v1171_v15 = vld [vmem:[%s1449_s1 + $0x180] sm:$0xff]  }
  0x19   :  { %1035 = vmatpush3.bf16.msra.mxu1 %v1131_v23  ;;  %1008 = vmatprep.subr.bf16.mxu0 %v1132_v24  ;;  %v14_v16 = vld [vmem:[%s1450_s0 + $0x10] sm:$0xff]  ;;  %v15_v18 = vld [vmem:[%s1450_s0 + $0x18] sm:$0xff] }
  0x1a   :  { %1036 = vmatprep.subr.bf16.mxu1 %v1133_v25  ;;  %v18_v17 = vld [vmem:[%s1450_s0 + $0x30] sm:$0xff]  ;;  %v19_v19 = vld [vmem:[%s1450_s0 + $0x38] sm:$0xff] }
  0x1b   :  { %v901_v20 = vcombine.low %v14_v16, %v18_v17  ;;  %v902_v21 = vcombine.high %v14_v16, %v18_v17  ;;  %v903_v22 = vcombine.low %v15_v18, %v19_v19  ;;  %v904_v23 = vcombine.high %v15_v18, %v19_v19  ;;  %v22_v24 = vld [vmem:[%s1450_s0 + $0x50] sm:$0xff] }
  0x1c   :  { %1009 = vmatpush3.bf16.msra.mxu0 %v1134_v26  ;;  %v26_v25 = vld [vmem:[%s1450_s0 + $0x70] sm:$0xff]  ;;  %v23_v26 = vld [vmem:[%s1450_s0 + $0x58] sm:$0xff] }
  0x1d   :  { %1037 = vmatpush3.bf16.msra.mxu1 %v1135_v27  ;;  %1010 = vmatprep.subr.bf16.mxu0 %v1136_v28  ;;  %v910_v27 = vcombine.high %v22_v24, %v26_v25  ;;  %v27_v28 = vld [vmem:[%s1450_s0 + $0x78] sm:$0xff] }
  0x1e   :  { %1038 = vmatprep.subr.bf16.mxu1 %v1137_v29  ;;  %v912_v29 = vcombine.high %v23_v26, %v27_v28 }
  0x20   :  { %1011 = vmatpush3.bf16.msra.mxu0 %v1138_v30  ;;  %v909_v30 = vcombine.low %v22_v24, %v26_v25 }
  0x21   :  { %1039 = vmatpush3.bf16.msra.mxu1 %v1139_v31  ;;  %1052 = vmatprep.subr.bf16.mxu0 %v1140_v40  ;;  %v911_v31 = vcombine.low %v23_v26, %v27_v28 }
  0x22   :  { %1080 = vmatprep.subr.bf16.mxu1 %v1141_v41 }
  0x23   :  { %653 = vmatmul.mubr.bf16.vlgmr.msra.gmra.mxu0 %v897_v35 }
  0x24   :  { %702 = vmatmul.mubr.bf16.vlgmr.msra.gmra.mxu1 %v899_v38  ;;  %1053 = vmatpush3.bf16.msra.mxu0 %v1142_v42 }
  0x25   :  { %1081 = vmatpush3.bf16.msra.mxu1 %v1143_v43  ;;  %1054 = vmatprep.subr.bf16.mxu0 %v1144_v44 }
  0x26   :  { %1082 = vmatprep.subr.bf16.mxu1 %v1145_v45  ;;  %660 = vmatprep.mubr.bf16.mxu0 %v906_v60 }
  0x27   :  { %709 = vmatprep.mubr.bf16.mxu1 %v908_v0 }
  0x28   :  { %1055 = vmatpush3.bf16.msra.mxu0 %v1146_v46 }
  0x29   :  { %1083 = vmatpush3.bf16.msra.mxu1 %v1147_v47  ;;  %1056 = vmatprep.subr.bf16.mxu0 %v1148_v48 }
  0x2a   :  { %1084 = vmatprep.subr.bf16.mxu1 %v1149_v49 }
  0x2b   :  { %661 = vmatmul.mubr.bf16.gmra.mxu0 %v905_v63 }
  0x2c   :  { %1057 = vmatpush3.bf16.msra.mxu0 %v1150_v50  ;;  %710 = vmatmul.mubr.bf16.gmra.mxu1 %v907_v2 }
  0x2d   :  { %1085 = vmatpush3.bf16.msra.mxu1 %v1151_v51  ;;  %1058 = vmatprep.subr.bf16.mxu0 %v1152_v52 }
  0x2e   :  { %1086 = vmatprep.subr.bf16.mxu1 %v1153_v53  ;;  %750 = vmatprep.mubr.bf16.mxu0 %v902_v21 }
  0x2f   :  { %799 = vmatprep.mubr.bf16.mxu1 %v904_v23 }
  0x30   :  { %1059 = vmatpush3.bf16.msra.mxu0 %v1154_v54 }
  0x31   :  { %1087 = vmatpush3.bf16.msra.mxu1 %v1155_v55  ;;  %1060 = vmatprep.subr.bf16.mxu0 %v1156_v56 }
  0x32   :  { %1088 = vmatprep.subr.bf16.mxu1 %v1157_v57 }
  0x34   :  { %1061 = vmatpush3.bf16.msra.mxu0 %v1158_v1 }
  0x35   :  { %1089 = vmatpush3.bf16.msra.mxu1 %v1159_v3  ;;  %1062 = vmatprep.subr.bf16.mxu0 %v1160_v4 }
  0x36   :  { %1090 = vmatprep.subr.bf16.mxu1 %v1161_v5 }
  0x38   :  { %1063 = vmatpush3.bf16.msra.mxu0 %v1162_v6 }
  0x39   :  { %1091 = vmatpush3.bf16.msra.mxu1 %v1163_v7  ;;  %1064 = vmatprep.subr.bf16.mxu0 %v1164_v8 }
  0x3a   :  { %1092 = vmatprep.subr.bf16.mxu1 %v1165_v9 }
  0x3c   :  { %1065 = vmatpush3.bf16.msra.mxu0 %v1166_v10 }
  0x3d   :  { %1093 = vmatpush3.bf16.msra.mxu1 %v1167_v11  ;;  %1066 = vmatprep.subr.bf16.mxu0 %v1168_v12 }
  0x3e   :  { %1094 = vmatprep.subr.bf16.mxu1 %v1169_v13 }
  0x40   :  { %1067 = vmatpush3.bf16.msra.mxu0 %v1170_v14 }
  0x41   :  { %1095 = vmatpush3.bf16.msra.mxu1 %v1171_v15 }
  0x43   :  { %751 = vmatmul.mubr.bf16.vlgmr.msra.gmra.mxu0 %v901_v20 }
  0x44   :  { %800 = vmatmul.mubr.bf16.vlgmr.msra.gmra.mxu1 %v903_v22  ;;  %758 = vmatprep.mubr.bf16.mxu0 %v910_v27 }
  0x45   :  { %807 = vmatprep.mubr.bf16.mxu1 %v912_v29 }
  0x4b   :  { %759 = vmatmul.mubr.bf16.gmra.mxu0 %v909_v30 }
  0x4c   :  { %808 = vmatmul.mubr.bf16.gmra.mxu1 %v911_v31 }
  0xe3   :  { %v1012_v32 = vpop.f32.mrf.mxu0 }
  0xe4   :  { %v1040_v33 = vpop.f32.mrf.mxu1 }
  0xe5   :  { %v1013_v34 = vpop.f32.mrf.mxu0 }
  0xe6   :  { %v1041_v35 = vpop.f32.mrf.mxu1  ;;  %v1014_v48 = vadd.f32 %v1013_v34, %v1012_v32 }
  0xe7   :  { %v1015_v36 = vpop.f32.mrf.mxu0  ;;  %v1042_v49 = vadd.f32 %v1041_v35, %v1040_v33 }
  0xe8   :  { %v1043_v37 = vpop.f32.mrf.mxu1 }
  0xe9   :  { %v1016_v38 = vpop.f32.mrf.mxu0  ;;  %v704_v54 = vadd.f32 %v1042_v49, %v1014_v48 }
  0xea   :  { %v1044_v39 = vpop.f32.mrf.mxu1  ;;  %v1017_v55 = vadd.f32 %v1016_v38, %v1015_v36 }
  0xeb   :  { %v1018_v40 = vpop.f32.mrf.mxu0  ;;  %v1045_v56 = vadd.f32 %v1044_v39, %v1043_v37 }
  0xec   :  { %v1046_v41 = vpop.f32.mrf.mxu1 }
  0xed   :  { %v1019_v42 = vpop.f32.mrf.mxu0  ;;  %v707_v1 = vadd.f32 %v1045_v56, %v1017_v55 }
  0xee   :  { %v1047_v43 = vpop.f32.mrf.mxu1  ;;  %v1020_v61 = vadd.f32 %v1019_v42, %v1018_v40 }
  0xef   :  { %v1021_v44 = vpop.f32.mrf.mxu0  ;;  %v1048_v62 = vadd.f32 %v1047_v43, %v1046_v41 }
  0xf0   :  { %v1049_v45 = vpop.f32.mrf.mxu1 }
  0xf1   :  { %v1022_v46 = vpop.f32.mrf.mxu0  ;;  %v712_v9 = vadd.f32 %v1048_v62, %v1020_v61 }
  0xf2   :  { %v1050_v47 = vpop.f32.mrf.mxu1  ;;  %v1023_v12 = vadd.f32 %v1022_v46, %v1021_v44 }
  0xf3   :  { %v1051_v13 = vadd.f32 %v1050_v47, %v1049_v45 }
  0xf5   :  { %v715_v25 = vadd.f32 %v1051_v13, %v1023_v12 }
 0x103   :  { %v1068_v50 = vpop.f32.mrf.mxu0 }
 0x104   :  { %v1096_v51 = vpop.f32.mrf.mxu1 }
 0x105   :  { %v1069_v52 = vpop.f32.mrf.mxu0 }
 0x106   :  { %v1097_v53 = vpop.f32.mrf.mxu1  ;;  %v1070_v57 = vadd.f32 %v1069_v52, %v1068_v50 }
 0x107   :  { %v1071_v58 = vpop.f32.mrf.mxu0  ;;  %v1098_v2 = vadd.f32 %v1097_v53, %v1096_v51 }
 0x108   :  { %v1099_v59 = vpop.f32.mrf.mxu1  ;;  %v753_v60 = vadd.f32 %v1070_v57, %v704_v54 }
 0x109   :  { %v1072_v63 = vpop.f32.mrf.mxu0 }
 0x10a   :  { %v1100_v0 = vpop.f32.mrf.mxu1  ;;  %v1073_v3 = vadd.f32 %v1072_v63, %v1071_v58  ;;  %v1431_v6 = vadd.f32 %v1098_v2, %v753_v60 }
 0x10b   :  { %v1074_v4 = vpop.f32.mrf.mxu0  ;;  %v1101_v8 = vadd.f32 %v1100_v0, %v1099_v59 }
 0x10c   :  { %v1102_v5 = vpop.f32.mrf.mxu1  ;;  %v756_v7 = vadd.f32 %v1073_v3, %v707_v1  ;;  %v833_v18 = vmul.f32 %v1431_v6, %v1431_v6 }
 0x10d   :  { %v1075_v10 = vpop.f32.mrf.mxu0 }
 0x10e   :  { %v1103_v11 = vpop.f32.mrf.mxu1  ;;  %v1433_v14 = vadd.f32 %v1101_v8, %v756_v7  ;;  %v1076_v15 = vadd.f32 %v1075_v10, %v1074_v4 }
 0x10f   :  { %v1077_v16 = vpop.f32.mrf.mxu0  ;;  %v1104_v22 = vadd.f32 %v1103_v11, %v1102_v5 }
 0x110   :  { %v1105_v17 = vpop.f32.mrf.mxu1  ;;  %v816_v19 = vadd.f32 %v1433_v14, %v1431_v6  ;;  %v834_v20 = vmul.f32 %v1433_v14, %v1433_v14  ;;  %v761_v21 = vadd.f32 %v1076_v15, %v712_v9 }
 0x111   :  { %v1078_v23 = vpop.f32.mrf.mxu0 }
 0x112   :  { %v1106_v24 = vpop.f32.mrf.mxu1  ;;  %v817_v26 = vrot.slane %v816_v19, 4  ;;  %v837_v27 = vadd.f32 %v834_v20, %v833_v18  ;;  %v1079_v28 = vadd.f32 %v1078_v23, %v1077_v16  ;;  %v810_v29 = vadd.f32 %v1104_v22, %v761_v21 }
 0x113   :  { %v1107_v33 = vadd.f32 %v1106_v24, %v1105_v17 }
 0x114   :  { %v818_v30 = vadd.f32 %v817_v26, %v816_v19  ;;  %v838_v31 = vrot.slane %v837_v27, 4  ;;  %v764_v32 = vadd.f32 %v1079_v28, %v715_v25  ;;  %v835_v37 = vmul.f32 %v810_v29, %v810_v29 }
 0x116   :  { %v819_v34 = vrot.slane %v818_v30, 2  ;;  %v839_v35 = vadd.f32 %v838_v31, %v837_v27  ;;  %v813_v36 = vadd.f32 %v1107_v33, %v764_v32 }
 0x118   :  { %v820_v38 = vadd.f32 %v819_v34, %v818_v30  ;;  %v840_v39 = vrot.slane %v839_v35, 2  ;;  %v823_v40 = vadd.f32 %v813_v36, %v810_v29  ;;  %v836_v41 = vmul.f32 %v813_v36, %v813_v36 }
 0x11a   :  { %v821_v42 = vrot.slane %v820_v38, 1  ;;  %v841_v43 = vadd.f32 %v840_v39, %v839_v35  ;;  %v824_v44 = vrot.slane %v823_v40, 4  ;;  %v844_v45 = vadd.f32 %v836_v41, %v835_v37 }
 0x11c   :  { %v822_v46 = vadd.f32 %v821_v42, %v820_v38  ;;  %v842_v47 = vrot.slane %v841_v43, 1  ;;  %v825_v48 = vadd.f32 %v824_v44, %v823_v40  ;;  %v845_v49 = vrot.slane %v844_v45, 4 }
 0x11e   :  { %v831_v50 = vmul.f32 0.0625, %v822_v46  ;;  %v843_v51 = vadd.f32 %v842_v47, %v841_v43  ;;  %v826_v52 = vrot.slane %v825_v48, 2  ;;  %v846_v53 = vadd.f32 %v845_v49, %v844_v45 }
 0x120   :  { %v851_v54 = vmul.f32 0.0625, %v843_v51  ;;  %v853_v55 = vmul.f32 %v831_v50, %v831_v50  ;;  %v827_v56 = vadd.f32 %v826_v52, %v825_v48  ;;  %v847_v57 = vrot.slane %v846_v53, 2 }
 0x121   :  { %v857_v7 = vsub.f32 %v1431_v6, %v831_v50  ;;  %v858_v8 = vsub.f32 %v1433_v14, %v831_v50 }
 0x122   :  { %v855_v58 = vsub.f32 %v851_v54, %v853_v55  ;;  %v828_v59 = vrot.slane %v827_v56, 1  ;;  %v848_v60 = vadd.f32 %v847_v57, %v846_v53 }
 0x124   :  { %v861_v61 = vadd.f32 1e-05, %v855_v58  ;;  %v829_v62 = vadd.f32 %v828_v59, %v827_v56  ;;  %v849_v63 = vrot.slane %v848_v60, 1 }
 0x126   :  { %1172 = vrsqrt.f32 %v861_v61  ;;  %v832_v0 = vmul.f32 0.0625, %v829_v62  ;;  %v850_v1 = vadd.f32 %v849_v63, %v848_v60 }
 0x128   :  { %v852_v2 = vmul.f32 0.0625, %v850_v1  ;;  %v854_v3 = vmul.f32 %v832_v0, %v832_v0  ;;  %v859_v16 = vsub.f32 %v810_v29, %v832_v0  ;;  %v860_v17 = vsub.f32 %v813_v36, %v832_v0 }
 0x12a   :  { %v856_v4 = vsub.f32 %v852_v2, %v854_v3 }
 0x12c   :  { %v862_v5 = vadd.f32 1e-05, %v856_v4 }
 0x12e   :  { %1174 = vrsqrt.f32 %v862_v5 }
 0x133   :  { %v1173_v9 = vpop.eup %1172 }
 0x134   :  { %v865_v10 = vmul.f32 %v1173_v9, %v857_v7  ;;  %v866_v11 = vmul.f32 %v1173_v9, %v858_v8 }
 0x136   :  { %v869_v12 = vmax.f32 %v865_v10, 0.0  ;;  %v870_v13 = vmax.f32 %v866_v11, 0.0 }
 0x138   :  { %v988_v15 = vpack.c.bf16 %v870_v13, %v869_v12 }
 0x13a   :  { %989 = vst [vmem:[%s1451_s2] sm:$0xff] %v988_v15  }
 0x13b   :  { %v1175_v18 = vpop.eup %1174 }
 0x13c   :  { %v867_v19 = vmul.f32 %v1175_v18, %v859_v16  ;;  %v868_v20 = vmul.f32 %v1175_v18, %v860_v17 }
 0x13e   :  { %v871_v21 = vmax.f32 %v867_v19, 0.0  ;;  %v872_v22 = vmax.f32 %v868_v20, 0.0 }
 0x140   :  { %v993_v6 = vpack.c.bf16 %v872_v22, %v871_v21 }
 0x142   :  { %995 = vst [vmem:[%s1451_s2 + $0x8] sm:$0xff] %v993_v6  }

</bundles_post_ra>
